<compile_context>
chip_gen: v6e
topology: v6e:2x2x1
jax: 0.10.0
libtpu: 0.0.40
codegen_flags: <defaults>
</compile_context>

<pallas_src>
import jax
import jax.numpy as jnp
from jax.experimental import pallas as pl
from jax.experimental.pallas import tpu as pltpu

INPUT_DIM = 24
EXP_DIM1 = 100
EXP_DIM2 = 100
EXP_DIM3 = 200
INNER1 = EXP_DIM1 // 2   # 50
INNER2 = EXP_DIM2 // 2   # 50
INNER3 = EXP_DIM3 // 2   # 100
N_CAT = 4
LN_EPS = 1e-5
DPAD = 128               # lane-dense padded width for the conv-stack GLUs
OUT_PAD = 128            # lane-dense output width (col 0 is the real output)


def _sigmoid(z):
    # exp on the EUP; exact reciprocal (approx=False) keeps the 5 stacked GLU
    # gates from compounding the ~2^-12 approx error (review accuracy note).
    return pl.reciprocal(1.0 + jnp.exp(-z))


def _layernorm_rows(z, gamma, beta):
    # PyTorch LayerNorm semantics over the last axis (biased variance).
    mean = jnp.mean(z, axis=-1, keepdims=True)
    d = z - mean
    var = jnp.mean(d * d, axis=-1, keepdims=True)
    return d * jax.lax.rsqrt(var + LN_EPS) * gamma + beta


def _glu_linear_2d(h, wv, wg, bv, bg):
    # Pre-split (and, for the conv stack, 128-lane zero-padded) value/gate
    # weights: each matmul output is already the contiguous half, so no lane
    # slicing happens in the kernel.  bf16 MXU operands, f32 accumulation;
    # sigmoid / multiply stay in f32.  Zero-padded gate columns give
    # sigmoid(0)=0.5 times a zero value column => padded lanes stay exactly 0.
    hb = h.astype(wv.dtype)
    v = jnp.dot(hb, wv, preferred_element_type=jnp.float32) + bv
    g = jnp.dot(hb, wg, preferred_element_type=jnp.float32) + bg
    return v * _sigmoid(g)


def _glu_linear_3d(h, wv, wg, bv, bg):
    # Flatten (TB, N, F) -> (TB*N, F): one big MXU matmul instead of TB small
    # batched ones (no per-batch weight broadcast).
    tb, n, f = h.shape
    out = _glu_linear_2d(h.reshape(tb * n, f), wv, wg, bv, bg)
    return out.reshape(tb, n, out.shape[-1])


def _graph_mix(adj, h):
    # out[b, i, :] = sum_j adj[b, i, j] * h[b, j, :]
    # Always on the MXU as a batched einsum: the previous per-j lane-slice +
    # broadcast VPU loop saturated the XLU, while the MXU is idle at this
    # point.  Adjacency and activations stay f32 for accuracy (the MXU has
    # plenty of slack at these tiny widths).
    return jnp.einsum('bij,bjd->bid', adj, h,
                      preferred_element_type=jnp.float32)


def fcn_gc_kernel(feat_ref, cat_ref, adj_ref,
                  w1v_ref, w1g_ref, b1v_ref, b1g_ref,
                  w2v_ref, w2g_ref, b2v_ref, b2g_ref,
                  w3v_ref, w3g_ref, b3v_ref, b3g_ref,
                  ln3g_ref, ln3b_ref,
                  wcv_ref, wcg_ref, bcv_ref, bcg_ref,
                  ln4g_ref, ln4b_ref,
                  wclv_ref, wclg_ref, bclv_ref, bclg_ref,
                  ln5g_ref, ln5b_ref,
                  wo_ref, bo_ref,
                  out_ref):
    feats = feat_ref[...]          # (TB, N, 24) bf16
    cats = cat_ref[...]            # (TB, N, 4)  f32
    adj = adj_ref[...]             # (TB, N, N)  f32

    # conv1 + GLU (128-lane padded), graph mix, conv2 + GLU (padded),
    # graph mix, conv3 + GLU (exact 50-wide output feeding the head).
    h = _glu_linear_3d(feats, w1v_ref[...], w1g_ref[...], b1v_ref[...], b1g_ref[...])
    h = _graph_mix(adj, h)
    h = _glu_linear_3d(h, w2v_ref[...], w2g_ref[...], b2v_ref[...], b2g_ref[...])
    h = _graph_mix(adj, h)
    h = _glu_linear_3d(h, w3v_ref[...], w3g_ref[...], b3v_ref[...], b3g_ref[...])  # (TB, N, 50)

    # categories^T @ h -> (TB, 4, 50); torch.cat over the 4 categories is just
    # a lane concat into a (TB, 200) slab.  Kept in f32 (tiny op, and the
    # synthetic categories are arbitrary floats, not 0/1 indicators).
    c = jnp.einsum('bnc,bnd->bcd', cats, h, preferred_element_type=jnp.float32)
    c = jnp.concatenate([c[:, k, :] for k in range(N_CAT)], axis=-1)   # (TB, 200)

    z = _layernorm_rows(c, ln3g_ref[...], ln3b_ref[...])               # lnorm3
    z = _glu_linear_2d(z, wcv_ref[...], wcg_ref[...], bcv_ref[...], bcg_ref[...])   # clayer + GLU
    z = _layernorm_rows(z, ln4g_ref[...], ln4b_ref[...])               # lnorm4
    z = _glu_linear_2d(z, wclv_ref[...], wclg_ref[...], bclv_ref[...], bclg_ref[...])  # compile_layer1 + GLU
    z = _layernorm_rows(z, ln5g_ref[...], ln5b_ref[...])               # lnorm5

    # o_layer, emitted 128-lane wide (weights zero-padded beyond column 0) so
    # the output store is unmasked / lane-dense.
    out_ref[...] = (jnp.dot(z, wo_ref[...], preferred_element_type=jnp.float32)
                    + bo_ref[...])


def init_params(key):
    """Deterministic synthetic init (PyTorch-Linear-style uniform bounds)."""
    def linear_init(k, fan_in, fan_out):
        kw, kb = jax.random.split(k)
        bound = 1.0 / float(fan_in) ** 0.5
        w = jax.random.uniform(kw, (fan_in, fan_out), jnp.float32, -bound, bound)
        b = jax.random.uniform(kb, (1, fan_out), jnp.float32, -bound, bound)
        return w, b

    ks = jax.random.split(key, 6)
    p = {}
    p['w1'], p['b1'] = linear_init(ks[0], INPUT_DIM, EXP_DIM1)
    p['w2'], p['b2'] = linear_init(ks[1], INNER1, EXP_DIM1)
    p['w3'], p['b3'] = linear_init(ks[2], INNER1, EXP_DIM2)
    p['wc'], p['bc'] = linear_init(ks[3], N_CAT * INNER2, EXP_DIM3)
    p['wcl'], p['bcl'] = linear_init(ks[4], INNER3, 2 * INNER3)
    p['wo'], p['bo'] = linear_init(ks[5], INNER3, 1)
    # LayerNorm params at PyTorch defaults (gamma=1, beta=0).
    p['ln3_g'] = jnp.ones((N_CAT * INNER2,), jnp.float32)
    p['ln3_b'] = jnp.zeros((N_CAT * INNER2,), jnp.float32)
    p['ln4_g'] = jnp.ones((INNER3,), jnp.float32)
    p['ln4_b'] = jnp.zeros((INNER3,), jnp.float32)
    p['ln5_g'] = jnp.ones((INNER3,), jnp.float32)
    p['ln5_b'] = jnp.zeros((INNER3,), jnp.float32)
    return p


def _pad_to(a, shape):
    out = jnp.zeros(shape, a.dtype)
    return out.at[tuple(slice(0, s) for s in a.shape)].set(a)


def prepare_params(p):
    """One-time weight prep (outside the hot path): split GLU value/gate
    column halves, zero-pad the conv-stack halves to 128 lanes (lane-dense
    sigmoid / multiply / graph-mix slabs, identical math since padded columns
    stay 0), cast MXU operands to bf16, pad the 1-wide output head to 128."""
    def split_glu(w, b, d, rows_pad=None, cols_pad=None):
        wv, wg = w[:, :d], w[:, d:]
        bv, bg = b[:, :d], b[:, d:]
        if rows_pad is not None or cols_pad is not None:
            r = rows_pad if rows_pad is not None else w.shape[0]
            c = cols_pad if cols_pad is not None else d
            wv, wg = _pad_to(wv, (r, c)), _pad_to(wg, (r, c))
            bv, bg = _pad_to(bv, (1, c)), _pad_to(bg, (1, c))
        return (wv.astype(jnp.bfloat16), wg.astype(jnp.bfloat16),
                bv.astype(jnp.float32), bg.astype(jnp.float32))

    q = {}
    # conv stack: outputs of conv1/conv2 padded to 128 lanes; conv2/conv3
    # input rows padded to 128 (the extra rows are zero so the padded input
    # columns contribute nothing); conv3 output kept at 50 for the head.
    q['w1v'], q['w1g'], q['b1v'], q['b1g'] = split_glu(p['w1'], p['b1'], INNER1,
                                                       cols_pad=DPAD)
    q['w2v'], q['w2g'], q['b2v'], q['b2g'] = split_glu(p['w2'], p['b2'], INNER1,
                                                       rows_pad=DPAD, cols_pad=DPAD)
    q['w3v'], q['w3g'], q['b3v'], q['b3g'] = split_glu(p['w3'], p['b3'], INNER2,
                                                       rows_pad=DPAD)
    # head: exact widths (LayerNorm over exactly 200 / 100 features).
    q['wcv'], q['wcg'], q['bcv'], q['bcg'] = split_glu(p['wc'], p['bc'], INNER3)
    q['wclv'], q['wclg'], q['bclv'], q['bclg'] = split_glu(p['wcl'], p['bcl'], INNER3)
    q['ln3g'] = p['ln3_g'].reshape(1, -1).astype(jnp.float32)
    q['ln3b'] = p['ln3_b'].reshape(1, -1).astype(jnp.float32)
    q['ln4g'] = p['ln4_g'].reshape(1, -1).astype(jnp.float32)
    q['ln4b'] = p['ln4_b'].reshape(1, -1).astype(jnp.float32)
    q['ln5g'] = p['ln5_g'].reshape(1, -1).astype(jnp.float32)
    q['ln5b'] = p['ln5_b'].reshape(1, -1).astype(jnp.float32)
    # o_layer kept f32 (final precision) and zero-padded to 128 lanes.
    q['wo'] = _pad_to(p['wo'], (INNER3, OUT_PAD)).astype(jnp.float32)
    q['bo'] = _pad_to(p['bo'], (1, OUT_PAD)).astype(jnp.float32)
    return q


def split_packed_input(x):
    """Split packed (B, N, 24+4+N+1) input once, outside the per-call path."""
    B, N, F = x.shape
    assert F == INPUT_DIM + N_CAT + N + 1, "feat dim must be 24 + 4 + N + 1"
    feats = x[:, :, :INPUT_DIM]
    cats = x[:, :, INPUT_DIM:INPUT_DIM + N_CAT]
    adj = x[:, :, INPUT_DIM + N_CAT:F - 1]
    return feats, cats, adj


def _vmem_limit_bytes():
    # Per-generation VMEM limit: ~half the physical capacity (64 MiB on
    # v5e/v6e's 128 MiB, 32 MiB on v7x's 64 MiB), never above 100 MiB.
    try:
        cap = int(pltpu.get_tpu_info().vmem_capacity_bytes)
    except Exception:
        cap = 128 * 1024 * 1024
    return max(32 * 1024 * 1024, min(cap // 2, 100 * 1024 * 1024))


def _auto_batch_tile(B, N, vmem_limit):
    """Largest batch tile whose double-buffered inputs/output plus live f32
    conv-stage slabs fit comfortably inside the VMEM budget."""
    budget = int(0.45 * vmem_limit)
    per_row = (2 * N * (INPUT_DIM * 2 + N_CAT * 4 + N * 4)   # dbl-buffered feats/cats/adj
               + 2 * OUT_PAD * 4                             # dbl-buffered output
               + 6 * N * DPAD * 4                            # live f32 conv-stage slabs
               + 4096)                                       # head intermediates
    tb = min(budget // per_row, 2048, B)
    return max(8, (tb // 8) * 8)


def fcn_gc_forward(feats, cats, adj, prep, *, batch_tile=None):
    B, N, _ = feats.shape
    vmem_limit = _vmem_limit_bytes()

    if batch_tile is None:
        TB = _auto_batch_tile(B, N, vmem_limit)
        tiles = pl.cdiv(B, TB)
        if tiles > 1 and tiles % 2 == 1:
            # v7x megacore: keep the parallel grid axis an even count so both
            # TensorCores get balanced tiles.
            TB = max(8, 8 * pl.cdiv(pl.cdiv(B, tiles + 1), 8))
    else:
        TB = max(8, 8 * pl.cdiv(int(batch_tile), 8))
    TB = min(TB, 8 * pl.cdiv(B, 8))

    num_tiles = pl.cdiv(B, TB)
    Bp = num_tiles * TB

    # feats are consumed in bf16 by the MXU anyway -> cast in the wrapper so
    # the dominant per-batch DMA is half-width (biggest win on v5e HBM BW).
    feats = feats.astype(jnp.bfloat16)
    cats = cats.astype(jnp.float32)
    adj = adj.astype(jnp.float32)   # kept f32 for graph-mix accuracy
    if Bp != B:
        pad = ((0, Bp - B), (0, 0), (0, 0))
        feats = jnp.pad(feats, pad)
        cats = jnp.pad(cats, pad)
        adj = jnp.pad(adj, pad)

    args = (feats, cats, adj,
            prep['w1v'], prep['w1g'], prep['b1v'], prep['b1g'],
            prep['w2v'], prep['w2g'], prep['b2v'], prep['b2g'],
            prep['w3v'], prep['w3g'], prep['b3v'], prep['b3g'],
            prep['ln3g'], prep['ln3b'],
            prep['wcv'], prep['wcg'], prep['bcv'], prep['bcg'],
            prep['ln4g'], prep['ln4b'],
            prep['wclv'], prep['wclg'], prep['bclv'], prep['bclg'],
            prep['ln5g'], prep['ln5b'],
            prep['wo'], prep['bo'])

    def batch_spec(shape):
        return pl.BlockSpec((TB,) + tuple(shape[1:]), lambda i: (i, 0, 0))

    def const_spec(a):
        zeros = (0,) * a.ndim
        return pl.BlockSpec(tuple(a.shape), lambda i, z=zeros: z)

    in_specs = ([batch_spec(feats.shape), batch_spec(cats.shape),
                 batch_spec(adj.shape)]
                + [const_spec(a) for a in args[3:]])
    out_specs = pl.BlockSpec((TB, OUT_PAD), lambda i: (i, 0))

    flops = 2 * Bp * (N * INPUT_DIM * 2 * DPAD
                      + 2 * N * N * DPAD
                      + N * DPAD * 2 * DPAD
                      + N * DPAD * 2 * INNER2
                      + N * N_CAT * INNER2
                      + N_CAT * INNER2 * 2 * INNER3
                      + INNER3 * 2 * INNER3
                      + INNER3 * OUT_PAD)
    transcendentals = Bp * (N * (2 * DPAD + INNER2) + 2 * INNER3)
    bytes_accessed = (sum(int(a.size) * a.dtype.itemsize for a in args)
                      + Bp * OUT_PAD * 4)

    out = pl.pallas_call(
        fcn_gc_kernel,
        out_shape=jax.ShapeDtypeStruct((Bp, OUT_PAD), jnp.float32),
        grid=(num_tiles,),
        in_specs=in_specs,
        out_specs=out_specs,
        compiler_params=pltpu.CompilerParams(
            dimension_semantics=("parallel",),
            vmem_limit_bytes=vmem_limit),
        cost_estimate=pl.CostEstimate(flops=flops,
                                      transcendentals=transcendentals,
                                      bytes_accessed=bytes_accessed),
    )(*args)
    # Column 0 is the real o_layer output; matches torch .squeeze() for B > 1.
    return out[:B, 0]


def fcn_gc_reference(x, p):
    """Pure-JAX f32 reference mirroring the PyTorch forward (for verification)."""
    hp = jax.lax.Precision.HIGHEST
    feats, cats, adj = split_packed_input(x)

    def glu(v, d):
        return v[..., :d] * jax.nn.sigmoid(v[..., d:])

    def ln(v, g, b):
        m = v.mean(-1, keepdims=True)
        var = ((v - m) ** 2).mean(-1, keepdims=True)
        return (v - m) / jnp.sqrt(var + LN_EPS) * g + b

    h = glu(jnp.einsum('bnf,fo->bno', feats, p['w1'], precision=hp) + p['b1'][0], INNER1)
    h = jnp.einsum('bij,bjd->bid', adj, h, precision=hp)
    h = glu(jnp.einsum('bnf,fo->bno', h, p['w2'], precision=hp) + p['b2'][0], INNER1)
    h = jnp.einsum('bij,bjd->bid', adj, h, precision=hp)
    h = glu(jnp.einsum('bnf,fo->bno', h, p['w3'], precision=hp) + p['b3'][0], INNER2)
    c = jnp.einsum('bnc,bnd->bcd', cats, h, precision=hp)
    cat = jnp.concatenate([c[:, i, :] for i in range(N_CAT)], axis=-1)
    z = jnp.einsum('bi,io->bo', ln(cat, p['ln3_g'], p['ln3_b']), p['wc'],
                   precision=hp) + p['bc'][0]
    z = glu(z, INNER3)
    z = ln(z, p['ln4_g'], p['ln4_b'])
    z = glu(jnp.einsum('bi,io->bo', z, p['wcl'], precision=hp) + p['bcl'][0], INNER3)
    z = ln(z, p['ln5_g'], p['ln5_b'])
    return (jnp.einsum('bi,io->bo', z, p['wo'], precision=hp) + p['bo'][0])[:, 0]


# TODO(synk): dropout / l2 and the unused lnorm1/lnorm2 never appear in the
# PyTorch forward pass; the train()/predict() host loops are out of scope.

if __name__ == "__main__":
    B, N = 16, 8
    F = INPUT_DIM + N_CAT + N + 1          # 24 + 4 + 8 + 1 = 37
    key = jax.random.PRNGKey(0)
    kx, kp = jax.random.split(key)
    x = jax.random.normal(kx, (B, N, F), jnp.float32)
    params = init_params(kp)

    # One-time prep outside the hot path: split the packed input and the GLU
    # value/gate weight halves (no re-slicing / reshaping per forward call).
    feats, cats, adj = split_packed_input(x)
    prep = prepare_params(params)

    # Explicit small tile to exercise the multi-step pipelined grid.
    y = fcn_gc_forward(feats, cats, adj, prep, batch_tile=8)   # grid = (2,)
    y = jax.block_until_ready(y)
    assert y.shape == (B,)
    assert bool(jnp.all(jnp.isfinite(y)))

    # Auto-sized tile path (what real deployments use).
    y_auto = fcn_gc_forward(feats, cats, adj, prep)
    y_auto = jax.block_until_ready(y_auto)
    assert jnp.allclose(y_auto, y, rtol=1e-3, atol=1e-3)

    y_ref = fcn_gc_reference(x, params)
    # bf16 MXU weight operands => slightly looser tol than pure f32.
    err = float(jnp.max(jnp.abs(y - y_ref)))
    assert jnp.allclose(y, y_ref, rtol=3e-2, atol=3e-2), (err, y, y_ref)

    print("KERNEL_OK")
</pallas_src>

<mosaic_0001>
module attributes {stable_mosaic.version = 11 : i64} {
  func.func @fcn_gc_kernel(%arg0: i32, %arg1: memref<8x8x24xbf16, #tpu.memory_space<vmem>>, %arg2: memref<8x8x4xf32, #tpu.memory_space<vmem>>, %arg3: memref<8x8x8xf32, #tpu.memory_space<vmem>>, %arg4: memref<24x128xbf16, #tpu.memory_space<vmem>>, %arg5: memref<24x128xbf16, #tpu.memory_space<vmem>>, %arg6: memref<1x128xf32, #tpu.memory_space<vmem>>, %arg7: memref<1x128xf32, #tpu.memory_space<vmem>>, %arg8: memref<128x128xbf16, #tpu.memory_space<vmem>>, %arg9: memref<128x128xbf16, #tpu.memory_space<vmem>>, %arg10: memref<1x128xf32, #tpu.memory_space<vmem>>, %arg11: memref<1x128xf32, #tpu.memory_space<vmem>>, %arg12: memref<128x50xbf16, #tpu.memory_space<vmem>>, %arg13: memref<128x50xbf16, #tpu.memory_space<vmem>>, %arg14: memref<1x50xf32, #tpu.memory_space<vmem>>, %arg15: memref<1x50xf32, #tpu.memory_space<vmem>>, %arg16: memref<1x200xf32, #tpu.memory_space<vmem>>, %arg17: memref<1x200xf32, #tpu.memory_space<vmem>>, %arg18: memref<200x100xbf16, #tpu.memory_space<vmem>>, %arg19: memref<200x100xbf16, #tpu.memory_space<vmem>>, %arg20: memref<1x100xf32, #tpu.memory_space<vmem>>, %arg21: memref<1x100xf32, #tpu.memory_space<vmem>>, %arg22: memref<1x100xf32, #tpu.memory_space<vmem>>, %arg23: memref<1x100xf32, #tpu.memory_space<vmem>>, %arg24: memref<100x100xbf16, #tpu.memory_space<vmem>>, %arg25: memref<100x100xbf16, #tpu.memory_space<vmem>>, %arg26: memref<1x100xf32, #tpu.memory_space<vmem>>, %arg27: memref<1x100xf32, #tpu.memory_space<vmem>>, %arg28: memref<1x100xf32, #tpu.memory_space<vmem>>, %arg29: memref<1x100xf32, #tpu.memory_space<vmem>>, %arg30: memref<100x128xf32, #tpu.memory_space<vmem>>, %arg31: memref<1x128xf32, #tpu.memory_space<vmem>>, %arg32: memref<8x128xf32, #tpu.memory_space<vmem>>) attributes {dimension_semantics = [#tpu.dimension_semantics<parallel>], iteration_bounds = array<i64: 2>, scalar_prefetch = 0 : i64, scratch_operands = 0 : i64, tpu.core_type = #tpu.core_type<tc>, window_params = [{transform_indices = @transform_0, window_bounds = array<i64: 8, 8, 24>}, {transform_indices = @transform_1, window_bounds = array<i64: 8, 8, 4>}, {transform_indices = @transform_2, window_bounds = array<i64: 8, 8, 8>}, {pipeline_mode = #tpu.pipeline_mode<synchronous>, transform_indices = @transform_3, window_bounds = array<i64: 24, 128>}, {pipeline_mode = #tpu.pipeline_mode<synchronous>, transform_indices = @transform_4, window_bounds = array<i64: 24, 128>}, {pipeline_mode = #tpu.pipeline_mode<synchronous>, transform_indices = @transform_5, window_bounds = array<i64: 1, 128>}, {pipeline_mode = #tpu.pipeline_mode<synchronous>, transform_indices = @transform_6, window_bounds = array<i64: 1, 128>}, {pipeline_mode = #tpu.pipeline_mode<synchronous>, transform_indices = @transform_7, window_bounds = array<i64: 128, 128>}, {pipeline_mode = #tpu.pipeline_mode<synchronous>, transform_indices = @transform_8, window_bounds = array<i64: 128, 128>}, {pipeline_mode = #tpu.pipeline_mode<synchronous>, transform_indices = @transform_9, window_bounds = array<i64: 1, 128>}, {pipeline_mode = #tpu.pipeline_mode<synchronous>, transform_indices = @transform_10, window_bounds = array<i64: 1, 128>}, {pipeline_mode = #tpu.pipeline_mode<synchronous>, transform_indices = @transform_11, window_bounds = array<i64: 128, 50>}, {pipeline_mode = #tpu.pipeline_mode<synchronous>, transform_indices = @transform_12, window_bounds = array<i64: 128, 50>}, {pipeline_mode = #tpu.pipeline_mode<synchronous>, transform_indices = @transform_13, window_bounds = array<i64: 1, 50>}, {pipeline_mode = #tpu.pipeline_mode<synchronous>, transform_indices = @transform_14, window_bounds = array<i64: 1, 50>}, {pipeline_mode = #tpu.pipeline_mode<synchronous>, transform_indices = @transform_15, window_bounds = array<i64: 1, 200>}, {pipeline_mode = #tpu.pipeline_mode<synchronous>, transform_indices = @transform_16, window_bounds = array<i64: 1, 200>}, {pipeline_mode = #tpu.pipeline_mode<synchronous>, transform_indices = @transform_17, window_bounds = array<i64: 200, 100>}, {pipeline_mode = #tpu.pipeline_mode<synchronous>, transform_indices = @transform_18, window_bounds = array<i64: 200, 100>}, {pipeline_mode = #tpu.pipeline_mode<synchronous>, transform_indices = @transform_19, window_bounds = array<i64: 1, 100>}, {pipeline_mode = #tpu.pipeline_mode<synchronous>, transform_indices = @transform_20, window_bounds = array<i64: 1, 100>}, {pipeline_mode = #tpu.pipeline_mode<synchronous>, transform_indices = @transform_21, window_bounds = array<i64: 1, 100>}, {pipeline_mode = #tpu.pipeline_mode<synchronous>, transform_indices = @transform_22, window_bounds = array<i64: 1, 100>}, {pipeline_mode = #tpu.pipeline_mode<synchronous>, transform_indices = @transform_23, window_bounds = array<i64: 100, 100>}, {pipeline_mode = #tpu.pipeline_mode<synchronous>, transform_indices = @transform_24, window_bounds = array<i64: 100, 100>}, {pipeline_mode = #tpu.pipeline_mode<synchronous>, transform_indices = @transform_25, window_bounds = array<i64: 1, 100>}, {pipeline_mode = #tpu.pipeline_mode<synchronous>, transform_indices = @transform_26, window_bounds = array<i64: 1, 100>}, {pipeline_mode = #tpu.pipeline_mode<synchronous>, transform_indices = @transform_27, window_bounds = array<i64: 1, 100>}, {pipeline_mode = #tpu.pipeline_mode<synchronous>, transform_indices = @transform_28, window_bounds = array<i64: 1, 100>}, {pipeline_mode = #tpu.pipeline_mode<synchronous>, transform_indices = @transform_29, window_bounds = array<i64: 100, 128>}, {pipeline_mode = #tpu.pipeline_mode<synchronous>, transform_indices = @transform_30, window_bounds = array<i64: 1, 128>}, {transform_indices = @transform_31, window_bounds = array<i64: 8, 128>}]} {
    %c0 = arith.constant 0 : index
    %c0_0 = arith.constant 0 : index
    %c0_1 = arith.constant 0 : index
    %0 = vector.load %arg1[%c0, %c0_0, %c0_1] : memref<8x8x24xbf16, #tpu.memory_space<vmem>>, vector<8x8x24xbf16>
    %c0_2 = arith.constant 0 : index
    %c0_3 = arith.constant 0 : index
    %c0_4 = arith.constant 0 : index
    %1 = vector.load %arg2[%c0_2, %c0_3, %c0_4] : memref<8x8x4xf32, #tpu.memory_space<vmem>>, vector<8x8x4xf32>
    %c0_5 = arith.constant 0 : index
    %c0_6 = arith.constant 0 : index
    %c0_7 = arith.constant 0 : index
    %2 = vector.load %arg3[%c0_5, %c0_6, %c0_7] : memref<8x8x8xf32, #tpu.memory_space<vmem>>, vector<8x8x8xf32>
    %c0_8 = arith.constant 0 : index
    %c0_9 = arith.constant 0 : index
    %3 = vector.load %arg4[%c0_8, %c0_9] : memref<24x128xbf16, #tpu.memory_space<vmem>>, vector<24x128xbf16>
    %c0_10 = arith.constant 0 : index
    %c0_11 = arith.constant 0 : index
    %4 = vector.load %arg5[%c0_10, %c0_11] : memref<24x128xbf16, #tpu.memory_space<vmem>>, vector<24x128xbf16>
    %c0_12 = arith.constant 0 : index
    %c0_13 = arith.constant 0 : index
    %5 = vector.load %arg6[%c0_12, %c0_13] : memref<1x128xf32, #tpu.memory_space<vmem>>, vector<1x128xf32>
    %c0_14 = arith.constant 0 : index
    %c0_15 = arith.constant 0 : index
    %6 = vector.load %arg7[%c0_14, %c0_15] : memref<1x128xf32, #tpu.memory_space<vmem>>, vector<1x128xf32>
    %7 = vector.shape_cast %0 : vector<8x8x24xbf16> to vector<64x24xbf16>
    %cst = arith.constant dense<0.000000e+00> : vector<64x128xf32>
    %8 = tpu.matmul %7, %3, %cst {dimension_numbers = #tpu.dot_dimension_numbers<[1], [0], [0], [1], [0, 0, 1, 1], [], []>} : vector<64x24xbf16>, vector<24x128xbf16>, vector<64x128xf32> -> vector<64x128xf32>
    %9 = vector.broadcast %5 : vector<1x128xf32> to vector<64x128xf32>
    %10 = arith.addf %8, %9 : vector<64x128xf32>
    %cst_16 = arith.constant dense<0.000000e+00> : vector<64x128xf32>
    %11 = tpu.matmul %7, %4, %cst_16 {dimension_numbers = #tpu.dot_dimension_numbers<[1], [0], [0], [1], [0, 0, 1, 1], [], []>} : vector<64x24xbf16>, vector<24x128xbf16>, vector<64x128xf32> -> vector<64x128xf32>
    %12 = vector.broadcast %6 : vector<1x128xf32> to vector<64x128xf32>
    %13 = arith.addf %11, %12 : vector<64x128xf32>
    %cst_17 = arith.constant 0.000000e+00 : f32
    %14 = vector.broadcast %cst_17 : f32 to vector<64x128xf32>
    %15 = arith.subf %14, %13 : vector<64x128xf32>
    %16 = math.exp %15 : vector<64x128xf32>
    %cst_18 = arith.constant 1.000000e+00 : f32
    %17 = vector.broadcast %cst_18 : f32 to vector<64x128xf32>
    %18 = arith.addf %17, %16 : vector<64x128xf32>
    %19 = tpu.reciprocal %18 : vector<64x128xf32> -> vector<64x128xf32>
    %20 = arith.mulf %10, %19 : vector<64x128xf32>
    %21 = vector.shape_cast %20 : vector<64x128xf32> to vector<8x8x128xf32>
    "tpu.trace_start"() <{level = 10 : i32, message = "bij,bjd->bid"}> : () -> ()
    %cst_19 = arith.constant dense<0.000000e+00> : vector<8x8x128xf32>
    %22 = tpu.matmul %2, %21, %cst_19 {dimension_numbers = #tpu.dot_dimension_numbers<[2], [1], [1], [2], [0, 0, 0, 1, 1, 2], [0], [0]>} : vector<8x8x8xf32>, vector<8x8x128xf32>, vector<8x8x128xf32> -> vector<8x8x128xf32>
    "tpu.trace_stop"() : () -> ()
    %c0_20 = arith.constant 0 : index
    %c0_21 = arith.constant 0 : index
    %23 = vector.load %arg8[%c0_20, %c0_21] : memref<128x128xbf16, #tpu.memory_space<vmem>>, vector<128x128xbf16>
    %c0_22 = arith.constant 0 : index
    %c0_23 = arith.constant 0 : index
    %24 = vector.load %arg9[%c0_22, %c0_23] : memref<128x128xbf16, #tpu.memory_space<vmem>>, vector<128x128xbf16>
    %c0_24 = arith.constant 0 : index
    %c0_25 = arith.constant 0 : index
    %25 = vector.load %arg10[%c0_24, %c0_25] : memref<1x128xf32, #tpu.memory_space<vmem>>, vector<1x128xf32>
    %c0_26 = arith.constant 0 : index
    %c0_27 = arith.constant 0 : index
    %26 = vector.load %arg11[%c0_26, %c0_27] : memref<1x128xf32, #tpu.memory_space<vmem>>, vector<1x128xf32>
    %27 = vector.shape_cast %22 : vector<8x8x128xf32> to vector<64x128xf32>
    %28 = arith.truncf %27 : vector<64x128xf32> to vector<64x128xbf16>
    %cst_28 = arith.constant dense<0.000000e+00> : vector<64x128xf32>
    %29 = tpu.matmul %28, %23, %cst_28 {dimension_numbers = #tpu.dot_dimension_numbers<[1], [0], [0], [1], [0, 0, 1, 1], [], []>} : vector<64x128xbf16>, vector<128x128xbf16>, vector<64x128xf32> -> vector<64x128xf32>
    %30 = vector.broadcast %25 : vector<1x128xf32> to vector<64x128xf32>
    %31 = arith.addf %29, %30 : vector<64x128xf32>
    %cst_29 = arith.constant dense<0.000000e+00> : vector<64x128xf32>
    %32 = tpu.matmul %28, %24, %cst_29 {dimension_numbers = #tpu.dot_dimension_numbers<[1], [0], [0], [1], [0, 0, 1, 1], [], []>} : vector<64x128xbf16>, vector<128x128xbf16>, vector<64x128xf32> -> vector<64x128xf32>
    %33 = vector.broadcast %26 : vector<1x128xf32> to vector<64x128xf32>
    %34 = arith.addf %32, %33 : vector<64x128xf32>
    %cst_30 = arith.constant 0.000000e+00 : f32
    %35 = vector.broadcast %cst_30 : f32 to vector<64x128xf32>
    %36 = arith.subf %35, %34 : vector<64x128xf32>
    %37 = math.exp %36 : vector<64x128xf32>
    %cst_31 = arith.constant 1.000000e+00 : f32
    %38 = vector.broadcast %cst_31 : f32 to vector<64x128xf32>
    %39 = arith.addf %38, %37 : vector<64x128xf32>
    %40 = tpu.reciprocal %39 : vector<64x128xf32> -> vector<64x128xf32>
    %41 = arith.mulf %31, %40 : vector<64x128xf32>
    %42 = vector.shape_cast %41 : vector<64x128xf32> to vector<8x8x128xf32>
    "tpu.trace_start"() <{level = 10 : i32, message = "bij,bjd->bid"}> : () -> ()
    %cst_32 = arith.constant dense<0.000000e+00> : vector<8x8x128xf32>
    %43 = tpu.matmul %2, %42, %cst_32 {dimension_numbers = #tpu.dot_dimension_numbers<[2], [1], [1], [2], [0, 0, 0, 1, 1, 2], [0], [0]>} : vector<8x8x8xf32>, vector<8x8x128xf32>, vector<8x8x128xf32> -> vector<8x8x128xf32>
    "tpu.trace_stop"() : () -> ()
    %c0_33 = arith.constant 0 : index
    %c0_34 = arith.constant 0 : index
    %44 = vector.load %arg12[%c0_33, %c0_34] : memref<128x50xbf16, #tpu.memory_space<vmem>>, vector<128x50xbf16>
    %c0_35 = arith.constant 0 : index
    %c0_36 = arith.constant 0 : index
    %45 = vector.load %arg13[%c0_35, %c0_36] : memref<128x50xbf16, #tpu.memory_space<vmem>>, vector<128x50xbf16>
    %c0_37 = arith.constant 0 : index
    %c0_38 = arith.constant 0 : index
    %46 = vector.load %arg14[%c0_37, %c0_38] : memref<1x50xf32, #tpu.memory_space<vmem>>, vector<1x50xf32>
    %c0_39 = arith.constant 0 : index
    %c0_40 = arith.constant 0 : index
    %47 = vector.load %arg15[%c0_39, %c0_40] : memref<1x50xf32, #tpu.memory_space<vmem>>, vector<1x50xf32>
    %48 = vector.shape_cast %43 : vector<8x8x128xf32> to vector<64x128xf32>
    %49 = arith.truncf %48 : vector<64x128xf32> to vector<64x128xbf16>
    %cst_41 = arith.constant dense<0.000000e+00> : vector<64x50xf32>
    %50 = tpu.matmul %49, %44, %cst_41 {dimension_numbers = #tpu.dot_dimension_numbers<[1], [0], [0], [1], [0, 0, 1, 1], [], []>} : vector<64x128xbf16>, vector<128x50xbf16>, vector<64x50xf32> -> vector<64x50xf32>
    %51 = vector.broadcast %46 : vector<1x50xf32> to vector<64x50xf32>
    %52 = arith.addf %50, %51 : vector<64x50xf32>
    %cst_42 = arith.constant dense<0.000000e+00> : vector<64x50xf32>
    %53 = tpu.matmul %49, %45, %cst_42 {dimension_numbers = #tpu.dot_dimension_numbers<[1], [0], [0], [1], [0, 0, 1, 1], [], []>} : vector<64x128xbf16>, vector<128x50xbf16>, vector<64x50xf32> -> vector<64x50xf32>
    %54 = vector.broadcast %47 : vector<1x50xf32> to vector<64x50xf32>
    %55 = arith.addf %53, %54 : vector<64x50xf32>
    %cst_43 = arith.constant 0.000000e+00 : f32
    %56 = vector.broadcast %cst_43 : f32 to vector<64x50xf32>
    %57 = arith.subf %56, %55 : vector<64x50xf32>
    %58 = math.exp %57 : vector<64x50xf32>
    %cst_44 = arith.constant 1.000000e+00 : f32
    %59 = vector.broadcast %cst_44 : f32 to vector<64x50xf32>
    %60 = arith.addf %59, %58 : vector<64x50xf32>
    %61 = tpu.reciprocal %60 : vector<64x50xf32> -> vector<64x50xf32>
    %62 = arith.mulf %52, %61 : vector<64x50xf32>
    %63 = vector.shape_cast %62 : vector<64x50xf32> to vector<8x8x50xf32>
    "tpu.trace_start"() <{level = 10 : i32, message = "bnc,bnd->bcd"}> : () -> ()
    %cst_45 = arith.constant dense<0.000000e+00> : vector<8x4x50xf32>
    %64 = tpu.matmul %1, %63, %cst_45 {dimension_numbers = #tpu.dot_dimension_numbers<[1], [1], [2], [2], [0, 0, 0, 2, 1, 2], [0], [0]>} : vector<8x8x4xf32>, vector<8x8x50xf32>, vector<8x4x50xf32> -> vector<8x4x50xf32>
    "tpu.trace_stop"() : () -> ()
    %65 = vector.extract_strided_slice %64 {offsets = [0, 0, 0], sizes = [8, 1, 50], strides = [1, 1, 1]} : vector<8x4x50xf32> to vector<8x1x50xf32>
    %66 = vector.shape_cast %65 : vector<8x1x50xf32> to vector<8x50xf32>
    %67 = vector.extract_strided_slice %64 {offsets = [0, 1, 0], sizes = [8, 1, 50], strides = [1, 1, 1]} : vector<8x4x50xf32> to vector<8x1x50xf32>
    %68 = vector.shape_cast %67 : vector<8x1x50xf32> to vector<8x50xf32>
    %69 = vector.extract_strided_slice %64 {offsets = [0, 2, 0], sizes = [8, 1, 50], strides = [1, 1, 1]} : vector<8x4x50xf32> to vector<8x1x50xf32>
    %70 = vector.shape_cast %69 : vector<8x1x50xf32> to vector<8x50xf32>
    %71 = vector.extract_strided_slice %64 {offsets = [0, 3, 0], sizes = [8, 1, 50], strides = [1, 1, 1]} : vector<8x4x50xf32> to vector<8x1x50xf32>
    %72 = vector.shape_cast %71 : vector<8x1x50xf32> to vector<8x50xf32>
    %73 = tpu.concatenate %66, %68, %70, %72 in 1 : vector<8x50xf32>, vector<8x50xf32>, vector<8x50xf32>, vector<8x50xf32> -> vector<8x200xf32>
    %c0_46 = arith.constant 0 : index
    %c0_47 = arith.constant 0 : index
    %74 = vector.load %arg16[%c0_46, %c0_47] : memref<1x200xf32, #tpu.memory_space<vmem>>, vector<1x200xf32>
    %c0_48 = arith.constant 0 : index
    %c0_49 = arith.constant 0 : index
    %75 = vector.load %arg17[%c0_48, %c0_49] : memref<1x200xf32, #tpu.memory_space<vmem>>, vector<1x200xf32>
    %cst_50 = arith.constant dense<0.000000e+00> : vector<8xf32>
    %76 = vector.multi_reduction <add>, %73, %cst_50 [1] : vector<8x200xf32> to vector<8xf32>
    %77 = vector.shape_cast %76 : vector<8xf32> to vector<8x1xf32>
    %cst_51 = arith.constant 2.000000e+02 : f32
    %78 = vector.broadcast %cst_51 : f32 to vector<8x1xf32>
    %79 = arith.divf %77, %78 : vector<8x1xf32>
    %80 = vector.broadcast %79 : vector<8x1xf32> to vector<8x200xf32>
    %81 = arith.subf %73, %80 : vector<8x200xf32>
    %82 = arith.mulf %81, %81 : vector<8x200xf32>
    %cst_52 = arith.constant dense<0.000000e+00> : vector<8xf32>
    %83 = vector.multi_reduction <add>, %82, %cst_52 [1] : vector<8x200xf32> to vector<8xf32>
    %84 = vector.shape_cast %83 : vector<8xf32> to vector<8x1xf32>
    %cst_53 = arith.constant 2.000000e+02 : f32
    %85 = vector.broadcast %cst_53 : f32 to vector<8x1xf32>
    %86 = arith.divf %84, %85 : vector<8x1xf32>
    %cst_54 = arith.constant 9.99999974E-6 : f32
    %87 = vector.broadcast %cst_54 : f32 to vector<8x1xf32>
    %88 = arith.addf %86, %87 : vector<8x1xf32>
    %89 = math.rsqrt %88 : vector<8x1xf32>
    %90 = vector.broadcast %89 : vector<8x1xf32> to vector<8x200xf32>
    %91 = arith.mulf %81, %90 : vector<8x200xf32>
    %92 = vector.broadcast %74 : vector<1x200xf32> to vector<8x200xf32>
    %93 = arith.mulf %91, %92 : vector<8x200xf32>
    %94 = vector.broadcast %75 : vector<1x200xf32> to vector<8x200xf32>
    %95 = arith.addf %93, %94 : vector<8x200xf32>
    %c0_55 = arith.constant 0 : index
    %c0_56 = arith.constant 0 : index
    %96 = vector.load %arg18[%c0_55, %c0_56] : memref<200x100xbf16, #tpu.memory_space<vmem>>, vector<200x100xbf16>
    %c0_57 = arith.constant 0 : index
    %c0_58 = arith.constant 0 : index
    %97 = vector.load %arg19[%c0_57, %c0_58] : memref<200x100xbf16, #tpu.memory_space<vmem>>, vector<200x100xbf16>
    %c0_59 = arith.constant 0 : index
    %c0_60 = arith.constant 0 : index
    %98 = vector.load %arg20[%c0_59, %c0_60] : memref<1x100xf32, #tpu.memory_space<vmem>>, vector<1x100xf32>
    %c0_61 = arith.constant 0 : index
    %c0_62 = arith.constant 0 : index
    %99 = vector.load %arg21[%c0_61, %c0_62] : memref<1x100xf32, #tpu.memory_space<vmem>>, vector<1x100xf32>
    %100 = arith.truncf %95 : vector<8x200xf32> to vector<8x200xbf16>
    %cst_63 = arith.constant dense<0.000000e+00> : vector<8x100xf32>
    %101 = tpu.matmul %100, %96, %cst_63 {dimension_numbers = #tpu.dot_dimension_numbers<[1], [0], [0], [1], [0, 0, 1, 1], [], []>} : vector<8x200xbf16>, vector<200x100xbf16>, vector<8x100xf32> -> vector<8x100xf32>
    %102 = vector.broadcast %98 : vector<1x100xf32> to vector<8x100xf32>
    %103 = arith.addf %101, %102 : vector<8x100xf32>
    %cst_64 = arith.constant dense<0.000000e+00> : vector<8x100xf32>
    %104 = tpu.matmul %100, %97, %cst_64 {dimension_numbers = #tpu.dot_dimension_numbers<[1], [0], [0], [1], [0, 0, 1, 1], [], []>} : vector<8x200xbf16>, vector<200x100xbf16>, vector<8x100xf32> -> vector<8x100xf32>
    %105 = vector.broadcast %99 : vector<1x100xf32> to vector<8x100xf32>
    %106 = arith.addf %104, %105 : vector<8x100xf32>
    %cst_65 = arith.constant 0.000000e+00 : f32
    %107 = vector.broadcast %cst_65 : f32 to vector<8x100xf32>
    %108 = arith.subf %107, %106 : vector<8x100xf32>
    %109 = math.exp %108 : vector<8x100xf32>
    %cst_66 = arith.constant 1.000000e+00 : f32
    %110 = vector.broadcast %cst_66 : f32 to vector<8x100xf32>
    %111 = arith.addf %110, %109 : vector<8x100xf32>
    %112 = tpu.reciprocal %111 : vector<8x100xf32> -> vector<8x100xf32>
    %113 = arith.mulf %103, %112 : vector<8x100xf32>
    %c0_67 = arith.constant 0 : index
    %c0_68 = arith.constant 0 : index
    %114 = vector.load %arg22[%c0_67, %c0_68] : memref<1x100xf32, #tpu.memory_space<vmem>>, vector<1x100xf32>
    %c0_69 = arith.constant 0 : index
    %c0_70 = arith.constant 0 : index
    %115 = vector.load %arg23[%c0_69, %c0_70] : memref<1x100xf32, #tpu.memory_space<vmem>>, vector<1x100xf32>
    %cst_71 = arith.constant dense<0.000000e+00> : vector<8xf32>
    %116 = vector.multi_reduction <add>, %113, %cst_71 [1] : vector<8x100xf32> to vector<8xf32>
    %117 = vector.shape_cast %116 : vector<8xf32> to vector<8x1xf32>
    %cst_72 = arith.constant 1.000000e+02 : f32
    %118 = vector.broadcast %cst_72 : f32 to vector<8x1xf32>
    %119 = arith.divf %117, %118 : vector<8x1xf32>
    %120 = vector.broadcast %119 : vector<8x1xf32> to vector<8x100xf32>
    %121 = arith.subf %113, %120 : vector<8x100xf32>
    %122 = arith.mulf %121, %121 : vector<8x100xf32>
    %cst_73 = arith.constant dense<0.000000e+00> : vector<8xf32>
    %123 = vector.multi_reduction <add>, %122, %cst_73 [1] : vector<8x100xf32> to vector<8xf32>
    %124 = vector.shape_cast %123 : vector<8xf32> to vector<8x1xf32>
    %cst_74 = arith.constant 1.000000e+02 : f32
    %125 = vector.broadcast %cst_74 : f32 to vector<8x1xf32>
    %126 = arith.divf %124, %125 : vector<8x1xf32>
    %cst_75 = arith.constant 9.99999974E-6 : f32
    %127 = vector.broadcast %cst_75 : f32 to vector<8x1xf32>
    %128 = arith.addf %126, %127 : vector<8x1xf32>
    %129 = math.rsqrt %128 : vector<8x1xf32>
    %130 = vector.broadcast %129 : vector<8x1xf32> to vector<8x100xf32>
    %131 = arith.mulf %121, %130 : vector<8x100xf32>
    %132 = vector.broadcast %114 : vector<1x100xf32> to vector<8x100xf32>
    %133 = arith.mulf %131, %132 : vector<8x100xf32>
    %134 = vector.broadcast %115 : vector<1x100xf32> to vector<8x100xf32>
    %135 = arith.addf %133, %134 : vector<8x100xf32>
    %c0_76 = arith.constant 0 : index
    %c0_77 = arith.constant 0 : index
    %136 = vector.load %arg24[%c0_76, %c0_77] : memref<100x100xbf16, #tpu.memory_space<vmem>>, vector<100x100xbf16>
    %c0_78 = arith.constant 0 : index
    %c0_79 = arith.constant 0 : index
    %137 = vector.load %arg25[%c0_78, %c0_79] : memref<100x100xbf16, #tpu.memory_space<vmem>>, vector<100x100xbf16>
    %c0_80 = arith.constant 0 : index
    %c0_81 = arith.constant 0 : index
    %138 = vector.load %arg26[%c0_80, %c0_81] : memref<1x100xf32, #tpu.memory_space<vmem>>, vector<1x100xf32>
    %c0_82 = arith.constant 0 : index
    %c0_83 = arith.constant 0 : index
    %139 = vector.load %arg27[%c0_82, %c0_83] : memref<1x100xf32, #tpu.memory_space<vmem>>, vector<1x100xf32>
    %140 = arith.truncf %135 : vector<8x100xf32> to vector<8x100xbf16>
    %cst_84 = arith.constant dense<0.000000e+00> : vector<8x100xf32>
    %141 = tpu.matmul %140, %136, %cst_84 {dimension_numbers = #tpu.dot_dimension_numbers<[1], [0], [0], [1], [0, 0, 1, 1], [], []>} : vector<8x100xbf16>, vector<100x100xbf16>, vector<8x100xf32> -> vector<8x100xf32>
    %142 = vector.broadcast %138 : vector<1x100xf32> to vector<8x100xf32>
    %143 = arith.addf %141, %142 : vector<8x100xf32>
    %cst_85 = arith.constant dense<0.000000e+00> : vector<8x100xf32>
    %144 = tpu.matmul %140, %137, %cst_85 {dimension_numbers = #tpu.dot_dimension_numbers<[1], [0], [0], [1], [0, 0, 1, 1], [], []>} : vector<8x100xbf16>, vector<100x100xbf16>, vector<8x100xf32> -> vector<8x100xf32>
    %145 = vector.broadcast %139 : vector<1x100xf32> to vector<8x100xf32>
    %146 = arith.addf %144, %145 : vector<8x100xf32>
    %cst_86 = arith.constant 0.000000e+00 : f32
    %147 = vector.broadcast %cst_86 : f32 to vector<8x100xf32>
    %148 = arith.subf %147, %146 : vector<8x100xf32>
    %149 = math.exp %148 : vector<8x100xf32>
    %cst_87 = arith.constant 1.000000e+00 : f32
    %150 = vector.broadcast %cst_87 : f32 to vector<8x100xf32>
    %151 = arith.addf %150, %149 : vector<8x100xf32>
    %152 = tpu.reciprocal %151 : vector<8x100xf32> -> vector<8x100xf32>
    %153 = arith.mulf %143, %152 : vector<8x100xf32>
    %c0_88 = arith.constant 0 : index
    %c0_89 = arith.constant 0 : index
    %154 = vector.load %arg28[%c0_88, %c0_89] : memref<1x100xf32, #tpu.memory_space<vmem>>, vector<1x100xf32>
    %c0_90 = arith.constant 0 : index
    %c0_91 = arith.constant 0 : index
    %155 = vector.load %arg29[%c0_90, %c0_91] : memref<1x100xf32, #tpu.memory_space<vmem>>, vector<1x100xf32>
    %cst_92 = arith.constant dense<0.000000e+00> : vector<8xf32>
    %156 = vector.multi_reduction <add>, %153, %cst_92 [1] : vector<8x100xf32> to vector<8xf32>
    %157 = vector.shape_cast %156 : vector<8xf32> to vector<8x1xf32>
    %cst_93 = arith.constant 1.000000e+02 : f32
    %158 = vector.broadcast %cst_93 : f32 to vector<8x1xf32>
    %159 = arith.divf %157, %158 : vector<8x1xf32>
    %160 = vector.broadcast %159 : vector<8x1xf32> to vector<8x100xf32>
    %161 = arith.subf %153, %160 : vector<8x100xf32>
    %162 = arith.mulf %161, %161 : vector<8x100xf32>
    %cst_94 = arith.constant dense<0.000000e+00> : vector<8xf32>
    %163 = vector.multi_reduction <add>, %162, %cst_94 [1] : vector<8x100xf32> to vector<8xf32>
    %164 = vector.shape_cast %163 : vector<8xf32> to vector<8x1xf32>
    %cst_95 = arith.constant 1.000000e+02 : f32
    %165 = vector.broadcast %cst_95 : f32 to vector<8x1xf32>
    %166 = arith.divf %164, %165 : vector<8x1xf32>
    %cst_96 = arith.constant 9.99999974E-6 : f32
    %167 = vector.broadcast %cst_96 : f32 to vector<8x1xf32>
    %168 = arith.addf %166, %167 : vector<8x1xf32>
    %169 = math.rsqrt %168 : vector<8x1xf32>
    %170 = vector.broadcast %169 : vector<8x1xf32> to vector<8x100xf32>
    %171 = arith.mulf %161, %170 : vector<8x100xf32>
    %172 = vector.broadcast %154 : vector<1x100xf32> to vector<8x100xf32>
    %173 = arith.mulf %171, %172 : vector<8x100xf32>
    %174 = vector.broadcast %155 : vector<1x100xf32> to vector<8x100xf32>
    %175 = arith.addf %173, %174 : vector<8x100xf32>
    %c0_97 = arith.constant 0 : index
    %c0_98 = arith.constant 0 : index
    %176 = vector.load %arg30[%c0_97, %c0_98] : memref<100x128xf32, #tpu.memory_space<vmem>>, vector<100x128xf32>
    %cst_99 = arith.constant dense<0.000000e+00> : vector<8x128xf32>
    %177 = tpu.matmul %175, %176, %cst_99 {dimension_numbers = #tpu.dot_dimension_numbers<[1], [0], [0], [1], [0, 0, 1, 1], [], []>} : vector<8x100xf32>, vector<100x128xf32>, vector<8x128xf32> -> vector<8x128xf32>
    %c0_100 = arith.constant 0 : index
    %c0_101 = arith.constant 0 : index
    %178 = vector.load %arg31[%c0_100, %c0_101] : memref<1x128xf32, #tpu.memory_space<vmem>>, vector<1x128xf32>
    %179 = vector.broadcast %178 : vector<1x128xf32> to vector<8x128xf32>
    %180 = arith.addf %177, %179 : vector<8x128xf32>
    %c0_102 = arith.constant 0 : index
    %c0_103 = arith.constant 0 : index
    %181 = vector.load %arg32[%c0_102, %c0_103] : memref<8x128xf32, #tpu.memory_space<vmem>>, vector<8x128xf32>
    tpu.vector_store %arg32[%c0_102, %c0_103], %180 {strides = array<i32>} : memref<8x128xf32, #tpu.memory_space<vmem>>, vector<8x128xf32>,
    return
  }
  func.func @transform_0(%arg0: i32) -> (i32, i32, i32) {
    %c0_i32 = arith.constant 0 : i32
    %c0_i32_0 = arith.constant 0 : i32
    %c0_i32_1 = arith.constant 0 : i32
    return %arg0, %c0_i32, %c0_i32_0 : i32, i32, i32
  }
  func.func @transform_1(%arg0: i32) -> (i32, i32, i32) {
    %c0_i32 = arith.constant 0 : i32
    %c0_i32_0 = arith.constant 0 : i32
    %c0_i32_1 = arith.constant 0 : i32
    return %arg0, %c0_i32, %c0_i32_0 : i32, i32, i32
  }
  func.func @transform_2(%arg0: i32) -> (i32, i32, i32) {
    %c0_i32 = arith.constant 0 : i32
    %c0_i32_0 = arith.constant 0 : i32
    %c0_i32_1 = arith.constant 0 : i32
    return %arg0, %c0_i32, %c0_i32_0 : i32, i32, i32
  }
  func.func @transform_3(%arg0: i32) -> (i32, i32) {
    %c0_i32 = arith.constant 0 : i32
    %c0_i32_0 = arith.constant 0 : i32
    %c0_i32_1 = arith.constant 0 : i32
    return %c0_i32, %c0_i32_0 : i32, i32
  }
  func.func @transform_4(%arg0: i32) -> (i32, i32) {
    %c0_i32 = arith.constant 0 : i32
    %c0_i32_0 = arith.constant 0 : i32
    %c0_i32_1 = arith.constant 0 : i32
    return %c0_i32, %c0_i32_0 : i32, i32
  }
  func.func @transform_5(%arg0: i32) -> (i32, i32) {
    %c0_i32 = arith.constant 0 : i32
    %c0_i32_0 = arith.constant 0 : i32
    %c0_i32_1 = arith.constant 0 : i32
    return %c0_i32, %c0_i32_0 : i32, i32
  }
  func.func @transform_6(%arg0: i32) -> (i32, i32) {
    %c0_i32 = arith.constant 0 : i32
    %c0_i32_0 = arith.constant 0 : i32
    %c0_i32_1 = arith.constant 0 : i32
    return %c0_i32, %c0_i32_0 : i32, i32
  }
  func.func @transform_7(%arg0: i32) -> (i32, i32) {
    %c0_i32 = arith.constant 0 : i32
    %c0_i32_0 = arith.constant 0 : i32
    %c0_i32_1 = arith.constant 0 : i32
    return %c0_i32, %c0_i32_0 : i32, i32
  }
  func.func @transform_8(%arg0: i32) -> (i32, i32) {
    %c0_i32 = arith.constant 0 : i32
    %c0_i32_0 = arith.constant 0 : i32
    %c0_i32_1 = arith.constant 0 : i32
    return %c0_i32, %c0_i32_0 : i32, i32
  }
  func.func @transform_9(%arg0: i32) -> (i32, i32) {
    %c0_i32 = arith.constant 0 : i32
    %c0_i32_0 = arith.constant 0 : i32
    %c0_i32_1 = arith.constant 0 : i32
    return %c0_i32, %c0_i32_0 : i32, i32
  }
  func.func @transform_10(%arg0: i32) -> (i32, i32) {
    %c0_i32 = arith.constant 0 : i32
    %c0_i32_0 = arith.constant 0 : i32
    %c0_i32_1 = arith.constant 0 : i32
    return %c0_i32, %c0_i32_0 : i32, i32
  }
  func.func @transform_11(%arg0: i32) -> (i32, i32) {
    %c0_i32 = arith.constant 0 : i32
    %c0_i32_0 = arith.constant 0 : i32
    %c0_i32_1 = arith.constant 0 : i32
    return %c0_i32, %c0_i32_0 : i32, i32
  }
  func.func @transform_12(%arg0: i32) -> (i32, i32) {
    %c0_i32 = arith.constant 0 : i32
    %c0_i32_0 = arith.constant 0 : i32
    %c0_i32_1 = arith.constant 0 : i32
    return %c0_i32, %c0_i32_0 : i32, i32
  }
  func.func @transform_13(%arg0: i32) -> (i32, i32) {
    %c0_i32 = arith.constant 0 : i32
    %c0_i32_0 = arith.constant 0 : i32
    %c0_i32_1 = arith.constant 0 : i32
    return %c0_i32, %c0_i32_0 : i32, i32
  }
  func.func @transform_14(%arg0: i32) -> (i32, i32) {
    %c0_i32 = arith.constant 0 : i32
    %c0_i32_0 = arith.constant 0 : i32
    %c0_i32_1 = arith.constant 0 : i32
    return %c0_i32, %c0_i32_0 : i32, i32
  }
  func.func @transform_15(%arg0: i32) -> (i32, i32) {
    %c0_i32 = arith.constant 0 : i32
    %c0_i32_0 = arith.constant 0 : i32
    %c0_i32_1 = arith.constant 0 : i32
    return %c0_i32, %c0_i32_0 : i32, i32
  }
  func.func @transform_16(%arg0: i32) -> (i32, i32) {
    %c0_i32 = arith.constant 0 : i32
    %c0_i32_0 = arith.constant 0 : i32
    %c0_i32_1 = arith.constant 0 : i32
    return %c0_i32, %c0_i32_0 : i32, i32
  }
  func.func @transform_17(%arg0: i32) -> (i32, i32) {
    %c0_i32 = arith.constant 0 : i32
    %c0_i32_0 = arith.constant 0 : i32
    %c0_i32_1 = arith.constant 0 : i32
    return %c0_i32, %c0_i32_0 : i32, i32
  }
  func.func @transform_18(%arg0: i32) -> (i32, i32) {
    %c0_i32 = arith.constant 0 : i32
    %c0_i32_0 = arith.constant 0 : i32
    %c0_i32_1 = arith.constant 0 : i32
    return %c0_i32, %c0_i32_0 : i32, i32
  }
  func.func @transform_19(%arg0: i32) -> (i32, i32) {
    %c0_i32 = arith.constant 0 : i32
    %c0_i32_0 = arith.constant 0 : i32
    %c0_i32_1 = arith.constant 0 : i32
    return %c0_i32, %c0_i32_0 : i32, i32
  }
  func.func @transform_20(%arg0: i32) -> (i32, i32) {
    %c0_i32 = arith.constant 0 : i32
    %c0_i32_0 = arith.constant 0 : i32
    %c0_i32_1 = arith.constant 0 : i32
    return %c0_i32, %c0_i32_0 : i32, i32
  }
  func.func @transform_21(%arg0: i32) -> (i32, i32) {
    %c0_i32 = arith.constant 0 : i32
    %c0_i32_0 = arith.constant 0 : i32
    %c0_i32_1 = arith.constant 0 : i32
    return %c0_i32, %c0_i32_0 : i32, i32
  }
  func.func @transform_22(%arg0: i32) -> (i32, i32) {
    %c0_i32 = arith.constant 0 : i32
    %c0_i32_0 = arith.constant 0 : i32
    %c0_i32_1 = arith.constant 0 : i32
    return %c0_i32, %c0_i32_0 : i32, i32
  }
  func.func @transform_23(%arg0: i32) -> (i32, i32) {
    %c0_i32 = arith.constant 0 : i32
    %c0_i32_0 = arith.constant 0 : i32
    %c0_i32_1 = arith.constant 0 : i32
    return %c0_i32, %c0_i32_0 : i32, i32
  }
  func.func @transform_24(%arg0: i32) -> (i32, i32) {
    %c0_i32 = arith.constant 0 : i32
    %c0_i32_0 = arith.constant 0 : i32
    %c0_i32_1 = arith.constant 0 : i32
    return %c0_i32, %c0_i32_0 : i32, i32
  }
  func.func @transform_25(%arg0: i32) -> (i32, i32) {
    %c0_i32 = arith.constant 0 : i32
    %c0_i32_0 = arith.constant 0 : i32
    %c0_i32_1 = arith.constant 0 : i32
    return %c0_i32, %c0_i32_0 : i32, i32
  }
  func.func @transform_26(%arg0: i32) -> (i32, i32) {
    %c0_i32 = arith.constant 0 : i32
    %c0_i32_0 = arith.constant 0 : i32
    %c0_i32_1 = arith.constant 0 : i32
    return %c0_i32, %c0_i32_0 : i32, i32
  }
  func.func @transform_27(%arg0: i32) -> (i32, i32) {
    %c0_i32 = arith.constant 0 : i32
    %c0_i32_0 = arith.constant 0 : i32
    %c0_i32_1 = arith.constant 0 : i32
    return %c0_i32, %c0_i32_0 : i32, i32
  }
  func.func @transform_28(%arg0: i32) -> (i32, i32) {
    %c0_i32 = arith.constant 0 : i32
    %c0_i32_0 = arith.constant 0 : i32
    %c0_i32_1 = arith.constant 0 : i32
    return %c0_i32, %c0_i32_0 : i32, i32
  }
  func.func @transform_29(%arg0: i32) -> (i32, i32) {
    %c0_i32 = arith.constant 0 : i32
    %c0_i32_0 = arith.constant 0 : i32
    %c0_i32_1 = arith.constant 0 : i32
    return %c0_i32, %c0_i32_0 : i32, i32
  }
  func.func @transform_30(%arg0: i32) -> (i32, i32) {
    %c0_i32 = arith.constant 0 : i32
    %c0_i32_0 = arith.constant 0 : i32
    %c0_i32_1 = arith.constant 0 : i32
    return %c0_i32, %c0_i32_0 : i32, i32
  }
  func.func @transform_31(%arg0: i32) -> (i32, i32) {
    %c0_i32 = arith.constant 0 : i32
    %c0_i32_0 = arith.constant 0 : i32
    return %arg0, %c0_i32 : i32, i32
  }
}

</mosaic_0001>

<bundles_post_ra>
// kernel: tpu_custom_call.1
= control target key start
LH: loop header
LB: loop body
LE: loop exit
PB: predicated region body
PF: predicated region fallthrough
CT: control target
= control target key end

     0   :  { %s6236_s6 = smov 1   ;;  %s6237_s10 = smov 2   ;;  %s6989_s0 = inlined_call_operand.smem [shape: u32[32], index: -1, kind: input, shape index: {}] }
   0x1   :  { %s6291_s5 = sld [smem:[%s6989_s0]]   ;;  %s6238_s14 = smov 3  }
   0x2   :  { %s6296_s9 = sld [smem:[%s6989_s0 + %s6236_s6]]   ;;  %s6239_s18 = smov 4  }
   0x3   :  { %s6301_s13 = sld [smem:[%s6989_s0 + %s6237_s10]]   ;;  %s6240_s22 = smov 5  }
   0x4   :  { %s6306_s17 = sld [smem:[%s6989_s0 + %s6238_s14]]   ;;  %s6241_s26 = smov 6  }
   0x5   :  { %s6311_s21 = sld [smem:[%s6989_s0 + %s6239_s18]]   ;;  %s6242_s30 = smov 7  }
   0x6   :  { %s6316_s25 = sld [smem:[%s6989_s0 + %s6240_s22]]   ;;  %s6243_s4 = smov 8  }
   0x7   :  { %s6321_s29 = sld [smem:[%s6989_s0 + %s6241_s26]]   ;;  %s6244_s10 = smov 9  }
   0x8   :  { %s6326_s3 = sld [smem:[%s6989_s0 + %s6242_s30]]   ;;  %s6245_s15 = smov 10  }
   0x9   :  { %s6331_s8 = sld [smem:[%s6989_s0 + %s6243_s4]]   ;;  %s6246_s20 = smov 11  }
   0xa   :  { %7009 = sst [smem:[#allocation20_spill]] %s6306_s17  ;;  %s6247_s26 = smov 12  }
   0xb   :  { %7010 = sst [smem:[#allocation21_spill]] %s6311_s21  ;;  %s6248_s1 = smov 13  }
   0xc   :  { %s6336_s14 = sld [smem:[%s6989_s0 + %s6244_s10]]   ;;  %s6249_s7 = smov 14  }
   0xd   :  { %s6341_s19 = sld [smem:[%s6989_s0 + %s6245_s15]]   ;;  %s6250_s15 = smov 15  }
   0xe   :  { %s6346_s24 = sld [smem:[%s6989_s0 + %s6246_s20]]   ;;  %s6251_s22 = smov 16  }
   0xf   :  { %s6351_s30 = sld [smem:[%s6989_s0 + %s6247_s26]]   ;;  %s6252_s28 = smov 17  }
  0x10   :  { %s6356_s6 = sld [smem:[%s6989_s0 + %s6248_s1]]  }
  0x11   :  { %s6361_s12 = sld [smem:[%s6989_s0 + %s6249_s7]]   ;;  %s6253_s7 = smov 18  }
  0x12   :  { %s6366_s20 = sld [smem:[%s6989_s0 + %s6250_s15]]   ;;  %s6254_s15 = smov 19  }
  0x13   :  { %7011 = sst [smem:[#allocation22_spill]] %s6341_s19 }
  0x14   :  { %s6371_s27 = sld [smem:[%s6989_s0 + %s6251_s22]]   ;;  %s6255_s22 = smov 20  }
  0x15   :  { %s6376_s4 = sld [smem:[%s6989_s0 + %s6252_s28]]   ;;  %s6256_s28 = smov 21  }
  0x16   :  { %7012 = sst [smem:[#allocation23_spill]] %s6356_s6 }
  0x17   :  { %7013 = sst [smem:[#allocation24_spill]] %s6361_s12 }
  0x18   :  { %7014 = sst [smem:[#allocation25_spill]] %s6366_s20 }
  0x19   :  { %s6381_s6 = sld [smem:[%s6989_s0 + %s6253_s7]]   ;;  %s6257_s7 = smov 22  }
  0x1a   :  { %7015 = sst [smem:[#allocation26_spill]] %s6371_s27 }
  0x1b   :  { %7016 = sst [smem:[#allocation27_spill]] %s6376_s4 }
  0x1c   :  { %s6386_s20 = sld [smem:[%s6989_s0 + %s6254_s15]]   ;;  %s6258_s15 = smov 23  }
  0x1d   :  { %s6391_s27 = sld [smem:[%s6989_s0 + %s6255_s22]]   ;;  %s6259_s22 = smov 24  }
  0x1e   :  { %s6396_s4 = sld [smem:[%s6989_s0 + %s6256_s28]]   ;;  %s6260_s28 = smov 25  }
  0x1f   :  { %7017 = sst [smem:[#allocation28_spill]] %s6381_s6 }
  0x20   :  { %s6401_s6 = sld [smem:[%s6989_s0 + %s6257_s7]]   ;;  %s6261_s7 = smov 26  }
  0x22   :  { %7018 = sst [smem:[#allocation29_spill]] %s6386_s20 }
  0x23   :  { %7019 = sst [smem:[#allocation30_spill]] %s6391_s27 }
  0x24   :  { %7020 = sst [smem:[#allocation31_spill]] %s6396_s4 }
  0x25   :  { %s6406_s20 = sld [smem:[%s6989_s0 + %s6258_s15]]   ;;  %s6262_s15 = smov 27  }
  0x26   :  { %7021 = sst [smem:[#allocation32_spill]] %s6401_s6 }
  0x27   :  { %s6411_s27 = sld [smem:[%s6989_s0 + %s6259_s22]]   ;;  %s6263_s22 = smov 28  }
  0x28   :  { %s6416_s4 = sld [smem:[%s6989_s0 + %s6260_s28]]   ;;  %s6264_s28 = smov 29  }
  0x29   :  { %s6421_s6 = sld [smem:[%s6989_s0 + %s6261_s7]]   ;;  %s6265_s7 = smov 30  }
  0x2a   :  { %s6431_s12 = sld [smem:[%s6989_s0 + %s6263_s22]]  }
  0x2b   :  { %7022 = sst [smem:[#allocation33_spill]] %s6406_s20 }
  0x2c   :  { %s6426_s20 = sld [smem:[%s6989_s0 + %s6262_s15]]   ;;  %s6266_s15 = smov 31  }
  0x2e   :  { %7023 = sst [smem:[#allocation34_spill]] %s6416_s4 }
  0x2f   :  { %7024 = sst [smem:[#allocation35_spill]] %s6421_s6 }
  0x30   :  { %s6436_s4 = sld [smem:[%s6989_s0 + %s6264_s28]]  }
  0x31   :  { %s6441_s6 = sld [smem:[%s6989_s0 + %s6265_s7]]  }
  0x32   :  { %7025 = sst [smem:[#allocation36_spill]] %s6426_s20 }
  0x33   :  { %s6446_s20 = sld [smem:[%s6989_s0 + %s6266_s15]]  }
  0x34   :  { %68 = vsyncpa [#allocation3], 0 }
  0x35   :  { %69 = vsyncpa [#allocation6], 0 }
  0x36   :  { %70 = vsyncpa [#allocation9], 0 }
  0x37   :  { %71 = vsyncpa [#allocation12], 0 }
  0x38   :  { %72 = vsyncpa [#allocation4], 0 }
  0x39   :  { %74 = vsyncpa [#allocation4 + $0x1], 0  ;;  %s6448_s22 = smov 0   ;;  %s6450_s23 = smov 0  }
  0x3a   :  { %s6452_s26 = smov 0   ;;  %s6454_s28 = smov 0  }
  0x3b LB: > { %7026 = sst [smem:[#allocation37_spill]] %s6222_s22  ;;  %s6469_s0 = sadd.s32 4294967295, %s6234_s28   ;;  %s6234_s28 = sphi %s6454_s28, %s7073_s28   ;;  %s6230_s26 = sphi %s6452_s26, %s7075_s26   ;;  %s6226_s23 = sphi %s6450_s23, %s7077_s23   ;;  %s6222_s22 = sphi %s6448_s22, %s7076_s22  }
  0x3c   : > { %7027 = sst [smem:[#allocation38_spill]] %s6230_s26  ;;  %s5025_s1 = sadd.s32 4294967294, %s6234_s28  }
  0x3d   : > { %7028 = sst [smem:[#allocation39_spill]] %s6234_s28  ;;  %s6473_s2 = sadd.s32 1, %s6234_s28  }
  0x3e   : > { %7029 = sst [smem:[#allocation40_spill]] %s6473_s2  ;;  %s753_s7 = sadd.s32 1, %s6230_s26 }
  0x3f   : > { %s750_s10 = ssub.s32 %s6234_s28, %s6473_s2  ;;  %p763_p0 = scmp.ne.s32.totalorder %s6230_s26, %s6226_s23 }
  0x40   : > { %p751_p1 = scmp.eq.s32.totalorder %s750_s10, 0  ;;  %p764_p2 = scmp.eq.s32.totalorder %s6469_s0, 1 }
  0x41   : > { %p769_p3 = scmp.ne.s32.totalorder %s6226_s23, %s6222_s22  ;;  %p770_p4 = scmp.eq.s32.totalorder %s5025_s1, 1 }
  0x42   : > { %s6484_s11 = scalar_select %p751_p1, %s6230_s26, %s753_s7  }
  0x43   : > { %p6486_p5 = por %p764_p2, %p763_p0  ;;  %p6490_p6 = por %p770_p4, %p769_p3 }
  0x44   : > { %7030 = sst [smem:[#allocation41_spill]] %s6484_s11  ;;  %p5026_p7 = scmp.ge.s32.totalorder %s6234_s28, 1 }
  0x45   : > { %s7031_s15 = scalar_select %p6486_p5, 1, 0 }
  0x46   : > { %s7033_s16 = scalar_select %p6490_p6, 1, 0 }
  0x47   : > { %7032 = sst [smem:[#allocation42_spill]] %s7031_s15  ;;  %p777_p8 = scmp.lt.s32.totalorder %s6234_s28, 3 }
  0x48   : > { %7034 = sst [smem:[#allocation43_spill]] %s7033_s16  ;;  %p7001_p9 = scmp.eq.s32.totalorder %s6469_s0, 0 }
  0x49   : > { %p6497_p10 = pnand %p5026_p7, %p777_p8  ;;  %s6267_s1 = smov [#allocation5]  }
  0x4a   : > { %s802_s7 = sshll.u32 %s6267_s1, 4  ;;  %s6268_s11 = smov [#allocation8]   ;;  %s803_s7 = int_to_ptr.vmem [resolvable:$true] %s802_s7 }
  0x4b   : > { %s7035_s18 = scalar_select %p6497_p10, 1, 0 }
  0x4c   : > { %p5667_p11 = pneg %p6497_p10  ;;  %s827_s26 = sshll.u32 %s6268_s11, 4  ;;  %s828_s26 = int_to_ptr.vmem [resolvable:$true] %s827_s26 }
  0x4d   : > { %s6269_s2 = smov [#allocation11]   ;;  %s5987_s28 = scalar_lea.vmem %s803_s7, 192 }
  0x4e   : > { %p6505_p12 = pnand %p7001_p9, %p5667_p11  ;;  %s855_s16 = sshll.u32 %s6269_s2, 4  ;;  %s856_s16 = int_to_ptr.vmem [resolvable:$true] %s855_s16 }
  0x4f   : > { %p5988_p0 = scmp.ne.s32.totalorder %s803_s7, %s5987_s28  ;;  %p5995_p3 = scmp.lt.s32.totalorder %s803_s7, %s803_s7 }
  0x50   : > { %p6511_p13 = pneg %p6505_p12  ;;  %p5996_p4 = scmp.lt.s32.totalorder %s5987_s28, %s5987_s28 }
  0x52   : > { %p5990_p1 = pnand %p5988_p0, %p6511_p13  ;;  %p5997_p7 = por %p5996_p4, %p5995_p3 }
  0x54   : > { %p5991_p2 = pneg %p5990_p1 }
  0x56   : > { %p5998_p8 = pnand %p5997_p7, %p5991_p2 }
  0x58   : > { %6001 = shalt.err (!%p5998_p8)
}
  0x59   : > { %s7004_s11 = smov 64   ;;  %s7038_s21 = sld [smem:[#allocation21_spill]] }
  0x5a   : > { %s7006_s2 = smov 4   ;;  %s6013_s1 = scalar_lea.vmem %s828_s26, 16 }
  0x5b   : > { %p6014_p11 = scmp.ne.s32.totalorder %s828_s26, %s6013_s1  ;;  %s6020_s15 = scalar_lea.vmem %s828_s26, 32 }
  0x5c   : > { %p6021_p9 = scmp.lt.s32.totalorder %s828_s26, %s828_s26  ;;  %p6022_p3 = scmp.lt.s32.totalorder %s6020_s15, %s6013_s1 }
  0x5d   : > { %p6016_p0 = pnand %p6014_p11, %p6511_p13 }
  0x5e   : > { %p6023_p2 = por %p6022_p3, %p6021_p9 }
  0x5f   : > { %5673 = dma.hbm_to_vmem [thread:$0]  (!%p6505_p12), %s7038_s21, 192, %s803_s7, [#allocation6], %s7004_s11, %s7004_s11, %s7006_s2  }
  0x60   : > { %p6017_p1 = pneg %p6016_p0 }
  0x62   : > { %p6024_p4 = pnand %p6023_p2, %p6017_p1 }
  0x64   : > { %6027 = shalt.err (!%p6024_p4)
}
  0x65   : > { %5679 = dma.hbm_to_vmem [thread:$0]  (!%p6505_p12), %s6321_s29, 16, %s828_s26, [#allocation9]  }
  0x66   : > { %s6039_s28 = scalar_lea.vmem %s856_s16, 16  ;;  %s6046_s7 = scalar_lea.vmem %s856_s16, 32 }
  0x67   : > { %p6040_p7 = scmp.ne.s32.totalorder %s856_s16, %s6039_s28  ;;  %p6047_p11 = scmp.lt.s32.totalorder %s856_s16, %s856_s16 }
  0x68   : > { %p6048_p0 = scmp.lt.s32.totalorder %s6046_s7, %s6039_s28 }
  0x69   : > { %p6042_p8 = pnand %p6040_p7, %p6511_p13 }
  0x6a   : > { %p6049_p5 = por %p6048_p0, %p6047_p11 }
  0x6b   : > { %p6043_p6 = pneg %p6042_p8 }
  0x6d   : > { %p6050_p10 = pnand %p6049_p5, %p6043_p6 }
  0x6f   : > { %6053 = shalt.err (!%p6050_p10)
}
  0x70   : > { %s7039_s19 = sld [smem:[#allocation22_spill]]  ;;  %s6272_s15 = smov [#allocation2]  }
  0x71   : > { %s789_s1 = sshll.u32 %s6272_s15, 4  ;;  %s6273_s26 = smov [#allocation7]   ;;  %s790_s1 = int_to_ptr.vmem [resolvable:$true] %s789_s1 }
  0x72   : > { %s816_s11 = sshll.u32 %s6273_s26, 4  ;;  %s6065_s2 = scalar_lea.vmem %s790_s1, 192  ;;  %s817_s11 = int_to_ptr.vmem [resolvable:$true] %s816_s11 }
  0x73   : > { %p6066_p9 = scmp.ne.s32.totalorder %s790_s1, %s6065_s2  ;;  %p6073_p2 = scmp.lt.s32.totalorder %s790_s1, %s790_s1 }
  0x74   : > { %p6074_p4 = scmp.lt.s32.totalorder %s6065_s2, %s6065_s2 }
  0x75   : > { %p6068_p1 = pnand %p6066_p9, %p6511_p13 }
  0x76   : > { %5685 = dma.hbm_to_vmem [thread:$0]  (!%p6505_p12), %s7039_s19, 16, %s856_s16, [#allocation12]  }
  0x77   : > { %p6069_p3 = pneg %p6068_p1  ;;  %p6075_p7 = por %p6074_p4, %p6073_p2 }
  0x79   : > { %p6076_p5 = pnand %p6075_p7, %p6069_p3 }
  0x7b   : > { %6079 = shalt.err (!%p6076_p5)
}
  0x7c   : > { %s7040_s28 = smov 4   ;;  %s7041_s7 = smov 64  }
  0x7d   : > { %s7042_s17 = sld [smem:[#allocation20_spill]]  ;;  %s6091_s16 = scalar_lea.vmem %s817_s11, 16 }
  0x7e   : > { %p6092_p6 = scmp.ne.s32.totalorder %s817_s11, %s6091_s16  ;;  %s6098_s15 = scalar_lea.vmem %s817_s11, 32 }
  0x7f   : > { %p6099_p11 = scmp.lt.s32.totalorder %s817_s11, %s817_s11  ;;  %p6100_p0 = scmp.lt.s32.totalorder %s6098_s15, %s6091_s16 }
  0x80   : > { %p6094_p10 = pnand %p6092_p6, %p6511_p13 }
  0x81   : > { %p6101_p9 = por %p6100_p0, %p6099_p11 }
  0x82   : > { %p6095_p8 = pneg %p6094_p10 }
  0x83   : > { %5670 = dma.hbm_to_vmem [thread:$0]  (!%p6505_p12), %s7042_s17, 192, %s790_s1, [#allocation3], %s7041_s7, %s7041_s7, %s7040_s28  }
  0x84   : > { %p6102_p1 = pnand %p6101_p9, %p6095_p8 }
  0x86   : > { %6105 = shalt.err (!%p6102_p1)
}
  0x87   : > { %5676 = dma.hbm_to_vmem [thread:$0]  (!%p6505_p12), %s6316_s25, 16, %s817_s11, [#allocation6]  }
  0x88   : > { %s6274_s2 = smov [#allocation10]   ;;  %s6275_s1 = smov [#allocation13]  }
  0x89   : > { %s844_s26 = sshll.u32 %s6274_s2, 4  ;;  %s904_s17 = sshll.u32 %s6275_s1, 4  ;;  %s845_s26 = int_to_ptr.vmem [resolvable:$true] %s844_s26  ;;  %s905_s17 = int_to_ptr.vmem [resolvable:$true] %s904_s17 }
  0x8a   : > { %s6117_s19 = scalar_lea.vmem %s845_s26, 16  ;;  %s6124_s21 = scalar_lea.vmem %s845_s26, 32 }
  0x8b   : > { %p6118_p3 = scmp.ne.s32.totalorder %s845_s26, %s6117_s19  ;;  %p6125_p7 = scmp.lt.s32.totalorder %s845_s26, %s845_s26 }
  0x8c   : > { %p6126_p5 = scmp.lt.s32.totalorder %s6124_s21, %s6117_s19 }
  0x8d   : > { %p6120_p2 = pnand %p6118_p3, %p6511_p13 }
  0x8e   : > { %p6127_p6 = por %p6126_p5, %p6125_p7 }
  0x8f   : > { %p6121_p4 = pneg %p6120_p2 }
  0x91   : > { %p6128_p10 = pnand %p6127_p6, %p6121_p4 }
  0x93   : > { %6131 = shalt.err (!%p6128_p10)
}
  0x94   : > { %5682 = dma.hbm_to_vmem [thread:$0]  (!%p6505_p12), %s6336_s14, 16, %s845_s26, [#allocation9]  }
  0x95   : > { %s6143_s11 = scalar_lea.vmem %s905_s17, 832  ;;  %p6151_p9 = scmp.lt.s32.totalorder %s905_s17, %s905_s17 }
  0x96   : > { %p6144_p8 = scmp.ne.s32.totalorder %s905_s17, %s6143_s11  ;;  %p6152_p1 = scmp.lt.s32.totalorder %s6143_s11, %s6143_s11 }
  0x98   : > { %p6146_p11 = pnand %p6144_p8, %p6511_p13  ;;  %p6153_p3 = por %p6152_p1, %p6151_p9 }
  0x9a   : > { %p6147_p0 = pneg %p6146_p11 }
  0x9c   : > { %p6154_p2 = pnand %p6153_p3, %p6147_p0 }
  0x9e   : > { %6157 = shalt.err (!%p6154_p2)
}
  0x9f   : > { %5688 = dma.hbm_to_vmem [thread:$0]  (!%p6505_p12), %s6411_s27, 832, %s905_s17, [#allocation12], %s7041_s7, %s7041_s7, %s7040_s28  }
  0xa0   : > { %p7043_p4 = scmp.ne.s32.totalorder %s7035_s18, 0 }
  0xa1   : > { %p7044_p7 = scmp.eq.s32.totalorder (!%p7043_p4), %s6469_s0, 0 }
  0xa2   : > { %965 = sbr.rel (%p7043_p4) target bundleno = 3239 (0xca7), region = 144 }
  0xa7   : > { %6201 = dma.done.wait (%p7044_p7), [#allocation3], 192   ;;  %p7045_p13 = pmov %p7044_p7 }
  0xa8   : > { %p7046_p5 = pmov %p7044_p7 }
  0xa9   : > { %6203 = vsyncadd (%p7045_p13), [#allocation3], 4294967104 }
  0xaa   : > { %6205 = dma.done.wait (%p7046_p5), [#allocation6], 208   ;;  %p7047_p6 = pmov %p7046_p5 }
  0xab   : > { %p7048_p10 = pmov %p7046_p5 }
  0xac   : > { %6207 = vsyncadd (%p7047_p6), [#allocation6], 4294967088 }
  0xad   : > { %6209 = dma.done.wait (%p7048_p10), [#allocation9], 32   ;;  %p7049_p12 = pmov %p7046_p5 }
  0xae   : > { %p7050_p8 = pmov %p7046_p5 }
  0xaf   : > { %6211 = vsyncadd (%p7049_p12), [#allocation9], 4294967264 }
  0xb0   : > { %6213 = dma.done.wait (%p7050_p8), [#allocation12], 848   ;;  %p7051_p11 = pmov %p7046_p5 }
  0xb1   : > { %s5044_s17 = sshll.u32 %s6469_s0, 3  ;;  %vm1178_vm0 = vcmask 1043456   ;;  %v5786_v0 = vld [vmem:[#allocation2 + $0x8] ss:$0 sps:$4 sm:$0xff]   ;;  %v5787_v1 = vld [vmem:[#allocation2] sm:$0xff]   ;;  %vm1165_vm1 = vcmask 195584  }
  0xb2   : > { %6215 = vsyncadd (%p7051_p11), [#allocation12], 4294966448  ;;  %p1080_p0 = scmp.lt.s32.totalorder %s5044_s17, 15  ;;  %5635 = vmatprep.subr.msk.bf16.mxu1 %vm1178_vm0, %v5786_v0  ;;  %v1180_v2 = vsel %vm1178_vm0, %v5786_v0, 0  ;;  %5634 = vmatprep.subr.msk.bf16.mxu0 %vm1178_vm0, %v5786_v0  ;;  %v5790_v4 = vld [vmem:[#allocation5 + $0x8] ss:$0 sps:$4 sm:$0xff]  }
  0xb3   : > { %5632 = vmatpush3.bf16.msra.mxu1 %v1180_v2  ;;  %5326 = vmatpush3.bf16.msra.mxu0 %v1180_v2  ;;  %v1263_v7 = vsel %vm1178_vm0, %v5790_v4, 0  ;;  %v5791_v8 = vld [vmem:[#allocation5] sm:$0xff]   ;;  %v6276_v10 = vmov 0.0   ;;  %vm6277_vm2 = vmmov 0   ;;  %v5061_v15 = vld [vmem:[#allocation8] ss:$0 sm:$0xff] }
  0xb4   : > { %s7079_s17 = smov (!%p1080_p0, %s5044_s17), 15  ;;  %5631 = vmatprep.subr.bf16.mxu1 %v5787_v1  ;;  %5327 = vmatprep.subr.bf16.mxu0 %v5787_v1  ;;  %v5050_v63 = vld [vmem:[#allocation7] ss:$0 sm:$0xff]  ;;  %vm1378_vm3 = vcmask 64512   ;;  %s7052_s28 = sld [smem:[#allocation24_spill]]  ;;  %vm4020_vm4 = vcmask 1041409  }
  0xb5   : > { %s5045_s21 = sshll.u32 %s7079_s17, 2  ;;  %s5047_s22 = sshll.u32 %s7079_s17, 3  ;;  %vm4023_vm5 = vcmask 1042434   ;;  %vm4026_vm6 = vcmask 1043459   ;;  %vm4029_vm7 = vcmask 1044484   ;;  %vm4032_vm8 = vcmask 1045509  }
  0xb6   : > { %s1083_s19 = scalar_lea.vmem %s6291_s5, %s5045_s21  ;;  %s6613_s18 = scalar_lea.vmem %s6301_s13, %s5047_s22  ;;  %vm4035_vm9 = vcmask 1046534   ;;  %vm4038_vm10 = vcmask 1047559   ;;  %vm4092_vm11 = vcmask 408576   ;;  %vm4096_vm12 = vcmask 179200  }
  0xb7   : > { %v5788_v3 = vld [vmem:[%s1083_s19 + $0x10] sm:$0xff]   ;;  %v5789_v5 = vld [vmem:[%s1083_s19 + $0x18] sm:$0xff]   ;;  %v5792_v6 = vld [vmem:[%s1083_s19] sm:$0xff]   ;;  %5633 = vmatpush3.bf16.msra.mxu1 %v5787_v1  ;;  %5328 = vmatpush3.bf16.msra.mxu0 %v5787_v1  ;;  %s1089_s10 = scalar_lea.vmem %s6296_s9, %s5047_s22  ;;  %s7053_s7 = sld [smem:[#allocation23_spill]]  ;;  %vm4094_vm13 = vcmask 818176   ;;  %vm4100_vm14 = vcmask 588800  }
  0xb8   : > { %5333 = vmatprep.mubr.msk.bf16.mxu1 %vm1165_vm1, %v5788_v3  ;;  %v5793_v9 = vld [vmem:[%s1083_s19 + $0x8] sm:$0xff]   ;;  %5636 = vmatprep.subr.msk.bf16.mxu1 %vm1178_vm0, %v5790_v4  ;;  %s6278_s16 = smov 100   ;;  %s6279_s15 = smov 50   ;;  %vm4564_vm15 = vcmask 1041408  }
  0xb9   : > { %5329 = vmatprep.mubr.msk.bf16.mxu0 %vm1165_vm1, %v5792_v6  ;;  %5359 = vmatprep.subr.mxu0 %v6276_v10  ;;  %s7054_s2 = sld [smem:[#allocation27_spill]]  ;;  %s6280_s26 = smov 22  }
  0xba   : > { %5334 = vmatmul.mubr.msk.bf16.vlgmr.msra.gmra.mxu1 %vm1165_vm1, %v5789_v5  ;;  %5330 = vmatmul.mubr.msk.bf16.vlgmr.msra.gmra.mxu0 %vm1165_vm1, %v5793_v9  ;;  %s7055_s1 = sld [smem:[#allocation28_spill]] }
  0xbb   : > { %5338 = vmatpush3.bf16.msra.mxu1 %v1263_v7  ;;  %5341 = vmatprep.mubr.msk.bf16.mxu1 %vm1165_vm1, %v5792_v6  ;;  %s7056_s11 = sld [smem:[#allocation25_spill]] }
  0xbc   : > { %5339 = vmatprep.subr.bf16.mxu1 %v5791_v8  ;;  %5361 = vmatprep.mubr.msk.f32.mxu0 %vm6277_vm2, %v6276_v10  ;;  %s7057_s17 = sld [smem:[#allocation26_spill]] }
  0xbd   : > { %s7058_s21 = sld [smem:[#allocation30_spill]] }
  0xbe   : > { %s7059_s19 = sld [smem:[#allocation29_spill]] }
  0xbf   : > { %5340 = vmatpush3.bf16.msra.mxu1 %v5791_v8  ;;  %v6616_v8 = vld [vmem:[%s6613_s18 + $0x10] sm:$0xff]  ;;  %s7060_s22 = sld [smem:[#allocation33_spill]] }
  0xc0   : > { %5349 = vmatprep.subr.mxu1 %v6276_v10 }
  0xc2   : > { %5342 = vmatmul.mubr.msk.bf16.vlgmr.msra.gmra.mxu1 %vm1165_vm1, %v5793_v9 }
  0xc3   : > { %5345 = vmatprep.mubr.msk.bf16.mxu1 %vm1165_vm1, %v5788_v3 }
  0xca   : > { %5346 = vmatmul.mubr.msk.bf16.gmra.mxu1 %vm1165_vm1, %v5789_v5 }
  0xcb   : > { %5351 = vmatprep.mubr.msk.f32.mxu1 %vm6277_vm2, %v6276_v10 }
 0x17a   : > { %v6601_v11 = vpop.f32.mrf.mxu1  ;;  %v5331_v55 = vpop.f32.mrf.mxu0 }
 0x17b   : > { %v1225_v1 = vadd.f32 %v5331_v55, %v5050_v63 }
 0x17c   : > { %v6603_v12 = vpop.f32.mrf.mxu1  ;;  %v1216_v60 = vpop.f32.mrf.mxu0 }
 0x17d   : > { %v1217_v7 = vadd.f32 %v5050_v63, %v1216_v60 }
 0x17e   : > { %v6605_v13 = vpop.f32.mrf.mxu1  ;;  %v5332_v3 = vpop.f32.mrf.mxu0 }
 0x180   : > { %v6607_v14 = vpop.f32.mrf.mxu1 }
 0x182   : > { %v5343_v16 = vpop.f32.mrf.mxu1 }
 0x183   : > { %v1308_v17 = vadd.f32 %v5343_v16, %v5061_v15 }
 0x184   : > { %v1299_v18 = vpop.f32.mrf.mxu1 }
 0x185   : > { %v1332_v19 = vsub.f32 0.0, %v1308_v17  ;;  %v1300_v20 = vadd.f32 %v5061_v15, %v1299_v18  ;;  %v6619_v17 = vld [vmem:[%s6613_s18] sm:$0xff] }
 0x186   : > { %v5344_v21 = vpop.f32.mrf.mxu1 }
 0x187   : > { %v1342_v22 = vmul.f32 1.442695, %v1332_v19  ;;  %v1330_v23 = vsub.f32 0.0, %v1300_v20  ;;  %v1311_v24 = vadd.f32 %v5344_v21, %v5061_v15  ;;  %v1228_v21 = vadd.f32 %v5332_v3, %v5050_v63 }
 0x188   : > { %v1302_v25 = vpop.f32.mrf.mxu1 }
 0x189   : > { %5866 = vpow2.f32 %v1342_v22  ;;  %v1338_v26 = vmul.f32 1.442695, %v1330_v23  ;;  %v1333_v27 = vsub.f32 0.0, %v1311_v24  ;;  %v1303_v28 = vadd.f32 %v5061_v15, %v1302_v25  ;;  %v6632_v23 = vld [vmem:[%s6613_s18 + $0x8] sm:$0xff] }
 0x18a   : > { %v5347_v29 = vpop.f32.mrf.mxu1  ;;  %v1233_v24 = vadd.f32 %v5050_v63, %v6603_v12  ;;  %v1241_v12 = vadd.f32 %v6601_v11, %v5050_v63  ;;  %v1244_v11 = vadd.f32 %v6605_v13, %v5050_v63  ;;  %v6665_v13 = vld [vmem:[%s6613_s18 + $0x30] sm:$0xff] }
 0x18b   : > { %5868 = vpow2.f32 %v1338_v26  ;;  %v1344_v30 = vmul.f32 1.442695, %v1333_v27  ;;  %v1331_v31 = vsub.f32 0.0, %v1303_v28  ;;  %v1324_v32 = vadd.f32 %v5347_v29, %v5061_v15  ;;  %v6641_v29 = vld [vmem:[%s6613_s18 + $0x18] sm:$0xff] }
 0x18c   : > { %v1315_v33 = vpop.f32.mrf.mxu1 }
 0x18d   : > { %5870 = vpow2.f32 %v1344_v30  ;;  %v1340_v34 = vmul.f32 1.442695, %v1331_v31  ;;  %v1336_v35 = vsub.f32 0.0, %v1324_v32  ;;  %v1316_v36 = vadd.f32 %v5061_v15, %v1315_v33  ;;  %v6645_v30 = vld [vmem:[%s6613_s18 + $0x20] sm:$0xff]  ;;  %v5794_v33 = vld [vmem:[%s6326_s3 + $0x38] sm:$0xff]  }
 0x18e   : > { %v5348_v37 = vpop.f32.mrf.mxu1  ;;  %v1236_v32 = vadd.f32 %v5050_v63, %v6607_v14  ;;  %v6659_v14 = vld [vmem:[%s6613_s18 + $0x28] sm:$0xff] }
 0x18f   : > { %5872 = vpow2.f32 %v1340_v34  ;;  %v1350_v38 = vmul.f32 1.442695, %v1336_v35  ;;  %v1334_v39 = vsub.f32 0.0, %v1316_v36  ;;  %v1327_v40 = vadd.f32 %v5348_v37, %v5061_v15  ;;  %v5795_v37 = vld [vmem:[%s6331_s8 + $0x38] sm:$0xff]  }
 0x190   : > { %v1318_v41 = vpop.f32.mrf.mxu1 }
 0x191   : > { %5874 = vpow2.f32 %v1350_v38  ;;  %v1346_v42 = vmul.f32 1.442695, %v1334_v39  ;;  %v1337_v43 = vsub.f32 0.0, %v1327_v40  ;;  %v1319_v44 = vadd.f32 %v5061_v15, %v1318_v41  ;;  %v1219_v15 = vpop.f32.mrf.mxu0  ;;  %v5796_v39 = vld [vmem:[%s6326_s3 + $0x30] sm:$0xff]   ;;  %v6674_v40 = vld [vmem:[%s6613_s18 + $0x38] sm:$0xff]  ;;  %s7061_s18 = smov %s7060_s22 }
 0x192   : > { %v1220_v19 = vadd.f32 %v5050_v63, %v1219_v15  ;;  %v5797_v41 = vld [vmem:[%s6331_s8 + $0x30] sm:$0xff]  }
 0x193   : > { %5876 = vpow2.f32 %v1346_v42  ;;  %v1352_v45 = vmul.f32 1.442695, %v1337_v43  ;;  %v1335_v46 = vsub.f32 0.0, %v1319_v44  ;;  %v5798_v42 = vld [vmem:[%s6326_s3 + $0x28] sm:$0xff]   ;;  %v5800_v44 = vld [vmem:[%s6326_s3 + $0x20] sm:$0xff]  }
 0x194   : > { %v5799_v43 = vld [vmem:[%s6331_s8 + $0x28] sm:$0xff]  }
 0x195   : > { %5878 = vpow2.f32 %v1352_v45  ;;  %v1348_v47 = vmul.f32 1.442695, %v1335_v46  ;;  %v5801_v45 = vld [vmem:[%s6331_s8 + $0x20] sm:$0xff]   ;;  %v5802_v46 = vld [vmem:[%s6326_s3 + $0x18] sm:$0xff]  }
 0x196   : > { %v5867_v48 = vpop.eup %5866 }
 0x197   : > { %v1356_v49 = vadd.f32 1.0, %v5867_v48  ;;  %5880 = vpow2.f32 %v1348_v47  ;;  %v5803_v47 = vld [vmem:[%s6331_s8 + $0x18] sm:$0xff]   ;;  %v5804_v48 = vld [vmem:[%s6326_s3 + $0x10] sm:$0xff]  }
 0x198   : > { %v5869_v50 = vpop.eup %5868 }
 0x199   : > { %5882 = vrcp.f32 %v1356_v49  ;;  %v1354_v51 = vadd.f32 1.0, %v5869_v50  ;;  %v5805_v49 = vld [vmem:[%s6331_s8 + $0x10] sm:$0xff]   ;;  %v5806_v50 = vld [vmem:[%s6326_s3 + $0x8] sm:$0xff]  }
 0x19a   : > { %v5871_v52 = vpop.eup %5870 }
 0x19b   : > { %5884 = vrcp.f32 %v1354_v51  ;;  %v1357_v53 = vadd.f32 1.0, %v5871_v52  ;;  %v5807_v51 = vld [vmem:[%s6331_s8 + $0x8] sm:$0xff]   ;;  %v5808_v52 = vld [vmem:[%s6326_s3] sm:$0xff]  }
 0x19c   : > { %v5873_v54 = vpop.eup %5872 }
 0x19d   : > { %v1355_v56 = vadd.f32 1.0, %v5873_v54  ;;  %5886 = vrcp.f32 %v1357_v53  ;;  %v5809_v53 = vld [vmem:[%s6331_s8] sm:$0xff]  }
 0x19e   : > { %v5875_v57 = vpop.eup %5874 }
 0x19f   : > { %5888 = vrcp.f32 %v1355_v56  ;;  %v1360_v59 = vadd.f32 1.0, %v5875_v57 }
 0x1a0   : > { %v5877_v58 = vpop.eup %5876 }
 0x1a1   : > { %v1358_v61 = vadd.f32 1.0, %v5877_v58 }
 0x1a2   : > { %v5879_v62 = vpop.eup %5878 }
 0x1a3   : > { %5890 = vrcp.f32 %v1358_v61  ;;  %v1361_v0 = vadd.f32 1.0, %v5879_v62 }
 0x1a4   : > { %v5881_v2 = vpop.eup %5880  ;;  %5892 = vrcp.f32 %v1360_v59 }
 0x1a5   : > { %v1359_v4 = vadd.f32 1.0, %v5881_v2  ;;  %5894 = vrcp.f32 %v1361_v0 }
 0x1a6   : > { %v5883_v5 = vpop.eup %5882 }
 0x1a7   : > { %5896 = vrcp.f32 %v1359_v4  ;;  %v1372_v6 = vmul.f32 %v5883_v5, %v1225_v1 }
 0x1a8   : > { %v5885_v9 = vpop.eup %5884 }
 0x1a9   : > { %v1370_v16 = vmul.f32 %v5885_v9, %v1217_v7  ;;  %5360 = vmatpush3.msra.mxu0 %v1372_v6 }
 0x1aa   : > { %5362 = vmatmul.mubr.msk.f32.vlgmr.msra.gmra.mxu0 %vm1378_vm3, %v6616_v8  ;;  %5369 = vmatprep.subr.mxu0 %v6276_v10  ;;  %v5887_v18 = vpop.eup %5886 }
 0x1ab   : > { %5350 = vmatpush3.msra.mxu1 %v1370_v16  ;;  %5371 = vmatprep.mubr.msk.f32.mxu0 %vm6277_vm2, %v6276_v10  ;;  %v1373_v25 = vmul.f32 %v5887_v18, %v1228_v21  ;;  %v5085_v16 = vld [vmem:[#allocation11] ss:$0 sm:$0xff] }
 0x1ac   : > { %v5889_v20 = vpop.eup %5888  ;;  %5352 = vmatmul.mubr.msk.f32.vlgmr.msra.gmra.mxu1 %vm1378_vm3, %v6619_v17  ;;  %5354 = vmatprep.subr.mxu1 %v6276_v10 }
 0x1ad   : > { %v1371_v22 = vmul.f32 %v5889_v20, %v1220_v19  ;;  %5356 = vmatprep.mubr.msk.f32.mxu1 %vm6277_vm2, %v6276_v10 }
 0x1af   : > { %5355 = vmatpush3.msra.mxu1 %v1371_v22 }
 0x1b0   : > { %v5891_v26 = vpop.eup %5890  ;;  %5357 = vmatmul.mubr.msk.f32.vlgmr.msra.gmra.mxu1 %vm1378_vm3, %v6632_v23  ;;  %5364 = vmatprep.subr.mxu1 %v6276_v10 }
 0x1b1   : > { %v5893_v27 = vpop.eup %5892  ;;  %5365 = vmatpush3.msra.mxu1 %v1373_v25  ;;  %5366 = vmatprep.mubr.msk.f32.mxu1 %vm6277_vm2, %v6276_v10  ;;  %v1374_v28 = vmul.f32 %v5891_v26, %v1233_v24 }
 0x1b2   : > { %5374 = vmatprep.subr.mxu1 %v6276_v10  ;;  %v5895_v31 = vpop.eup %5894  ;;  %v1376_v35 = vmul.f32 %v5893_v27, %v1241_v12 }
 0x1b3   : > { %5370 = vmatpush3.msra.mxu0 %v1374_v28  ;;  %v1377_v38 = vmul.f32 %v5895_v31, %v1244_v11 }
 0x1b4   : > { %v5897_v34 = vpop.eup %5896  ;;  %5367 = vmatmul.mubr.msk.f32.vlgmr.msra.gmra.mxu1 %vm1378_vm3, %v6641_v29  ;;  %5379 = vmatprep.subr.mxu0 %v6276_v10 }
 0x1b5   : > { %5372 = vmatmul.mubr.msk.f32.vlgmr.msra.gmra.mxu0 %vm1378_vm3, %v6645_v30  ;;  %v1375_v36 = vmul.f32 %v5897_v34, %v1236_v32  ;;  %5376 = vmatprep.mubr.msk.f32.mxu1 %vm6277_vm2, %v6276_v10 }
 0x1b6   : > { %5380 = vmatpush3.msra.mxu0 %v1376_v35  ;;  %5381 = vmatprep.mubr.msk.f32.mxu0 %vm6277_vm2, %v6276_v10 }
 0x1b7   : > { %5375 = vmatpush3.msra.mxu1 %v1375_v36  ;;  %5389 = vmatprep.subr.bf16.mxu0 %v5794_v33 }
 0x1b8   : > { %5377 = vmatmul.mubr.msk.f32.vlgmr.msra.gmra.mxu1 %vm1378_vm3, %v6659_v14  ;;  %5384 = vmatprep.subr.mxu1 %v6276_v10 }
 0x1b9   : > { %5385 = vmatpush3.msra.mxu1 %v1377_v38  ;;  %5386 = vmatprep.mubr.msk.f32.mxu1 %vm6277_vm2, %v6276_v10 }
 0x1ba   : > { %5382 = vmatmul.mubr.msk.f32.vlgmr.msra.gmra.mxu0 %vm1378_vm3, %v6665_v13  ;;  %5413 = vmatprep.subr.bf16.mxu1 %v5795_v37 }
 0x1bb   : > { %5390 = vmatpush3.bf16.msra.mxu0 %v5794_v33 }
 0x1bc   : > { %5387 = vmatmul.mubr.msk.f32.vlgmr.msra.gmra.mxu1 %vm1378_vm3, %v6674_v40  ;;  %5391 = vmatprep.subr.bf16.mxu0 %v5796_v39 }
 0x1bd   : > { %5414 = vmatpush3.bf16.msra.mxu1 %v5795_v37 }
 0x1be   : > { %5415 = vmatprep.subr.bf16.mxu1 %v5797_v41 }
 0x1bf   : > { %5392 = vmatpush3.bf16.msra.mxu0 %v5796_v39 }
 0x1c0   : > { %5393 = vmatprep.subr.bf16.mxu0 %v5798_v42 }
 0x1c1   : > { %5416 = vmatpush3.bf16.msra.mxu1 %v5797_v41 }
 0x1c2   : > { %5417 = vmatprep.subr.bf16.mxu1 %v5799_v43 }
 0x1c3   : > { %5394 = vmatpush3.bf16.msra.mxu0 %v5798_v42 }
 0x1c4   : > { %5395 = vmatprep.subr.bf16.mxu0 %v5800_v44 }
 0x1c5   : > { %5418 = vmatpush3.bf16.msra.mxu1 %v5799_v43 }
 0x1c6   : > { %5419 = vmatprep.subr.bf16.mxu1 %v5801_v45 }
 0x1c7   : > { %5396 = vmatpush3.bf16.msra.mxu0 %v5800_v44 }
 0x1c8   : > { %5397 = vmatprep.subr.bf16.mxu0 %v5802_v46 }
 0x1c9   : > { %5420 = vmatpush3.bf16.msra.mxu1 %v5801_v45 }
 0x1ca   : > { %5421 = vmatprep.subr.bf16.mxu1 %v5803_v47 }
 0x1cb   : > { %5398 = vmatpush3.bf16.msra.mxu0 %v5802_v46 }
 0x1cc   : > { %5399 = vmatprep.subr.bf16.mxu0 %v5804_v48 }
 0x1cd   : > { %5422 = vmatpush3.bf16.msra.mxu1 %v5803_v47 }
 0x1ce   : > { %5423 = vmatprep.subr.bf16.mxu1 %v5805_v49 }
 0x1cf   : > { %5400 = vmatpush3.bf16.msra.mxu0 %v5804_v48 }
 0x1d0   : > { %5401 = vmatprep.subr.bf16.mxu0 %v5806_v50 }
 0x1d1   : > { %5424 = vmatpush3.bf16.msra.mxu1 %v5805_v49 }
 0x1d2   : > { %5425 = vmatprep.subr.bf16.mxu1 %v5807_v51 }
 0x1d3   : > { %5402 = vmatpush3.bf16.msra.mxu0 %v5806_v50 }
 0x1d4   : > { %5403 = vmatprep.subr.bf16.mxu0 %v5808_v52 }
 0x1d5   : > { %5426 = vmatpush3.bf16.msra.mxu1 %v5807_v51 }
 0x1d6   : > { %5427 = vmatprep.subr.bf16.mxu1 %v5809_v53 }
 0x1d7   : > { %5404 = vmatpush3.bf16.msra.mxu0 %v5808_v52 }
 0x1d8   : > { %5437 = vmatprep.subr.mxu0 %v6276_v10 }
 0x1d9   : > { %5428 = vmatpush3.bf16.msra.mxu1 %v5809_v53 }
 0x1da   : > { %5442 = vmatprep.subr.mxu1 %v6276_v10 }
 0x26a   : > { %v1594_v54 = vpop.f32.mrf.mxu0 }
 0x26c   : > { %v1448_v55 = vpop.f32.mrf.mxu1  ;;  %v5363_v56 = vpop.f32.mrf.mxu0 }
 0x26e   : > { %v5353_v57 = vpop.f32.mrf.mxu1 }
 0x270   : > { %v1521_v58 = vpop.f32.mrf.mxu1 }
 0x271   : > { %v1997_v59 = vpack.c.bf16 %v1521_v58, %v1448_v55 }
 0x272   : > { %v5358_v60 = vpop.f32.mrf.mxu1 }
 0x273   : > { %5405 = vmatprep.mubr.bf16.mxu0 %v1997_v59  ;;  %5429 = vmatprep.mubr.bf16.mxu1 %v1997_v59 }
 0x274   : > { %v1667_v61 = vpop.f32.mrf.mxu1 }
 0x275   : > { %v1998_v62 = vpack.c.bf16 %v1667_v61, %v1594_v54  ;;  %v1740_v63 = vpop.f32.mrf.mxu0 }
 0x276   : > { %v5368_v0 = vpop.f32.mrf.mxu1 }
 0x277   : > { %5406 = vmatmul.mubr.bf16.vlgmr.msra.gmra.mxu0 %v1998_v62  ;;  %5430 = vmatmul.mubr.bf16.vlgmr.msra.gmra.mxu1 %v1998_v62  ;;  %v5373_v1 = vpop.f32.mrf.mxu0 }
 0x278   : > { %v1813_v2 = vpop.f32.mrf.mxu1 }
 0x279   : > { %v1999_v3 = vpack.c.bf16 %v1813_v2, %v1740_v63 }
 0x27a   : > { %v5378_v4 = vpop.f32.mrf.mxu1  ;;  %v1886_v5 = vpop.f32.mrf.mxu0 }
 0x27b   : > { %5433 = vmatprep.mubr.bf16.mxu1 %v1999_v3  ;;  %5409 = vmatprep.mubr.bf16.mxu0 %v1999_v3 }
 0x27c   : > { %v1959_v6 = vpop.f32.mrf.mxu1  ;;  %v5383_v7 = vpop.f32.mrf.mxu0 }
 0x27d   : > { %v2000_v9 = vpack.c.bf16 %v1959_v6, %v1886_v5 }
 0x27e   : > { %v5388_v15 = vpop.f32.mrf.mxu1 }
 0x27f   : > { %5434 = vmatmul.mubr.bf16.gmra.mxu1 %v2000_v9  ;;  %5410 = vmatmul.mubr.bf16.gmra.mxu0 %v2000_v9  ;;  %v5076_v15 = vld [vmem:[#allocation10] ss:$0 sm:$0xff] }
 0x280   : > { %5439 = vmatprep.mubr.msk.f32.mxu0 %vm6277_vm2, %v6276_v10  ;;  %5444 = vmatprep.mubr.msk.f32.mxu1 %vm6277_vm2, %v6276_v10 }
 0x337   : > { %v5431_v18 = vpop.f32.mrf.mxu1  ;;  %v5407_v51 = vpop.f32.mrf.mxu0 }
 0x338   : > { %v2217_v19 = vadd.f32 %v5431_v18, %v5085_v16 }
 0x339   : > { %v2208_v20 = vpop.f32.mrf.mxu1  ;;  %v2089_v56 = vpop.f32.mrf.mxu0 }
 0x33a   : > { %v2241_v21 = vsub.f32 0.0, %v2217_v19  ;;  %v2209_v22 = vadd.f32 %v5085_v16, %v2208_v20  ;;  %v2090_v18 = vadd.f32 %v5076_v15, %v2089_v56  ;;  %v1107_v56 = vld [vmem:[%s1089_s10 + $0x8] sm:$0xff] }
 0x33b   : > { %v5432_v24 = vpop.f32.mrf.mxu1  ;;  %v5408_v60 = vpop.f32.mrf.mxu0 }
 0x33c   : > { %v2251_v25 = vmul.f32 1.442695, %v2241_v21  ;;  %v2239_v26 = vsub.f32 0.0, %v2209_v22  ;;  %v2220_v27 = vadd.f32 %v5432_v24, %v5085_v16  ;;  %v2098_v21 = vadd.f32 %v5407_v51, %v5076_v15  ;;  %v5823_v51 = vld [vmem:[%s6351_s30 + $0x8] sm:$0xff]  }
 0x33d   : > { %v2211_v28 = vpop.f32.mrf.mxu1  ;;  %v2092_v2 = vpop.f32.mrf.mxu0 }
 0x33e   : > { %5898 = vpow2.f32 %v2251_v25  ;;  %v2247_v12 = vmul.f32 1.442695, %v2239_v26  ;;  %v2242_v31 = vsub.f32 0.0, %v2220_v27  ;;  %v2212_v32 = vadd.f32 %v5085_v16, %v2211_v28 }
 0x33f   : > { %v5435_v33 = vpop.f32.mrf.mxu1  ;;  %v5411_v7 = vpop.f32.mrf.mxu0  ;;  %v2093_v26 = vadd.f32 %v5076_v15, %v2092_v2 }
 0x340   : > { %5900 = vpow2.f32 %v2247_v12  ;;  %v2253_v34 = vmul.f32 1.442695, %v2242_v31  ;;  %v2233_v35 = vadd.f32 %v5435_v33, %v5085_v16  ;;  %v2240_v11 = vsub.f32 0.0, %v2212_v32 }
 0x341   : > { %v2224_v36 = vpop.f32.mrf.mxu1  ;;  %v2105_v20 = vpop.f32.mrf.mxu0  ;;  %v2101_v12 = vadd.f32 %v5408_v60, %v5076_v15  ;;  %v1112_v60 = vld [vmem:[%s1089_s10 + $0x30] sm:$0xff] }
 0x342   : > { %5902 = vpow2.f32 %v2253_v34  ;;  %v2245_v37 = vsub.f32 0.0, %v2233_v35  ;;  %v2225_v38 = vadd.f32 %v5085_v16, %v2224_v36  ;;  %v2249_v39 = vmul.f32 1.442695, %v2240_v11 }
 0x343   : > { %v5436_v41 = vpop.f32.mrf.mxu1  ;;  %v5412_v27 = vpop.f32.mrf.mxu0  ;;  %v2106_v33 = vadd.f32 %v5076_v15, %v2105_v20  ;;  %v2114_v36 = vadd.f32 %v5411_v7, %v5076_v15 }
 0x344   : > { %v2259_v42 = vmul.f32 1.442695, %v2245_v37  ;;  %v2243_v43 = vsub.f32 0.0, %v2225_v38  ;;  %v2236_v44 = vadd.f32 %v5436_v41, %v5085_v16  ;;  %5904 = vpow2.f32 %v2249_v39  ;;  %v5810_v41 = vld [vmem:[%s6346_s24 + $0x38] sm:$0xff]  }
 0x345   : > { %v2227_v45 = vpop.f32.mrf.mxu1  ;;  %v2108_v35 = vpop.f32.mrf.mxu0 }
 0x346   : > { %5906 = vpow2.f32 %v2259_v42  ;;  %v2255_v46 = vmul.f32 1.442695, %v2243_v43  ;;  %v2246_v47 = vsub.f32 0.0, %v2236_v44  ;;  %v2228_v48 = vadd.f32 %v5085_v16, %v2227_v45  ;;  %v5813_v44 = vld [vmem:[%s6351_s30 + $0x30] sm:$0xff]   ;;  %v5814_v45 = vld [vmem:[%s6346_s24 + $0x28] sm:$0xff]  }
 0x347   : > { %v2109_v38 = vadd.f32 %v5076_v15, %v2108_v35  ;;  %v2117_v42 = vadd.f32 %v5412_v27, %v5076_v15 }
 0x348   : > { %5908 = vpow2.f32 %v2255_v46  ;;  %v2261_v49 = vmul.f32 1.442695, %v2246_v47  ;;  %v2244_v50 = vsub.f32 0.0, %v2228_v48  ;;  %v5817_v46 = vld [vmem:[%s6351_s30 + $0x20] sm:$0xff]   ;;  %v5818_v47 = vld [vmem:[%s6346_s24 + $0x18] sm:$0xff]   ;;  %v5820_v48 = vld [vmem:[%s6346_s24 + $0x10] sm:$0xff]  }
 0x34a   : > { %5910 = vpow2.f32 %v2261_v49  ;;  %v2257_v52 = vmul.f32 1.442695, %v2244_v50  ;;  %v5821_v49 = vld [vmem:[%s6351_s30 + $0x10] sm:$0xff]   ;;  %v5822_v50 = vld [vmem:[%s6346_s24 + $0x8] sm:$0xff]  }
 0x34b   : > { %v5899_v53 = vpop.eup %5898 }
 0x34c   : > { %v2265_v54 = vadd.f32 1.0, %v5899_v53  ;;  %5912 = vpow2.f32 %v2257_v52  ;;  %v5824_v52 = vld [vmem:[%s6346_s24] sm:$0xff]  }
 0x34d   : > { %v5901_v55 = vpop.eup %5900  ;;  %v5825_v53 = vld [vmem:[%s6351_s30] sm:$0xff]  }
 0x34e   : > { %v2263_v57 = vadd.f32 1.0, %v5901_v55  ;;  %5914 = vrcp.f32 %v2265_v54  ;;  %v1106_v54 = vld [vmem:[%s1089_s10] sm:$0xff]  ;;  %v1108_v55 = vld [vmem:[%s1089_s10 + $0x10] sm:$0xff] }
 0x34f   : > { %v5903_v58 = vpop.eup %5902  ;;  %3171 = vxpose.xlu0.b32.start.end [1/1] (short) (narrow) %v1106_v54, 8  ;;  %3381 = vxpose.xlu1.b32.start.end [1/1] (short) (narrow) %v1108_v55, 8 }
 0x350   : > { %5916 = vrcp.f32 %v2263_v57  ;;  %v2266_v59 = vadd.f32 1.0, %v5903_v58  ;;  %v1109_v57 = vld [vmem:[%s1089_s10 + $0x18] sm:$0xff]  ;;  %v1110_v58 = vld [vmem:[%s1089_s10 + $0x20] sm:$0xff] }
 0x351   : > { %v5905_v61 = vpop.eup %5904 }
 0x352   : > { %v2264_v63 = vadd.f32 1.0, %v5905_v61  ;;  %5918 = vrcp.f32 %v2266_v59  ;;  %v1111_v59 = vld [vmem:[%s1089_s10 + $0x28] sm:$0xff]  ;;  %v1113_v61 = vld [vmem:[%s1089_s10 + $0x38] sm:$0xff]  ;;  %s7062_s10 = sld [smem:[#allocation31_spill]] }
 0x353   : > { %v5907_v62 = vpop.eup %5906  ;;  %3276 = vxpose.xlu0.b32.start.end [1/1] (short) (narrow) %v1107_v56, 8  ;;  %3486 = vxpose.xlu1.b32.start.end [1/1] (short) (narrow) %v1109_v57, 8 }
 0x354   : > { %v2269_v0 = vadd.f32 1.0, %v5907_v62  ;;  %5920 = vrcp.f32 %v2264_v63 }
 0x355   : > { %v5909_v1 = vpop.eup %5908 }
 0x356   : > { %v2267_v3 = vadd.f32 1.0, %v5909_v1  ;;  %5922 = vrcp.f32 %v2269_v0 }
 0x357   : > { %v5911_v4 = vpop.eup %5910  ;;  %3591 = vxpose.xlu0.b32.start.end [1/1] (short) (narrow) %v1110_v58, 8  ;;  %3696 = vxpose.xlu1.b32.start.end [1/1] (short) (narrow) %v1111_v59, 8 }
 0x358   : > { %5924 = vrcp.f32 %v2267_v3  ;;  %v2270_v6 = vadd.f32 1.0, %v5911_v4 }
 0x359   : > { %v5913_v5 = vpop.eup %5912 }
 0x35a   : > { %v2268_v9 = vadd.f32 1.0, %v5913_v5 }
 0x35b   : > { %v5915_v16 = vpop.eup %5914  ;;  %3801 = vxpose.xlu0.b32.start.end [1/1] (short) (narrow) %v1112_v60, 8  ;;  %3906 = vxpose.xlu1.b32.start.end [1/1] (short) (narrow) %v1113_v61, 8 }
 0x35c   : > { %5926 = vrcp.f32 %v2268_v9  ;;  %v2281_v24 = vmul.f32 %v5915_v16, %v2098_v21 }
 0x35d   : > { %v5917_v19 = vpop.eup %5916  ;;  %5928 = vrcp.f32 %v2270_v6 }
 0x35e   : > { %v2279_v22 = vmul.f32 %v5917_v19, %v2090_v18 }
 0x35f   : > { %v5919_v25 = vpop.eup %5918 }
 0x360   : > { %5438 = vmatpush3.msra.mxu0 %v2279_v22  ;;  %v2282_v11 = vmul.f32 %v5919_v25, %v2101_v12 }
 0x361   : > { %5447 = vmatprep.subr.mxu0 %v6276_v10  ;;  %5440 = vmatmul.mubr.msk.f32.vlgmr.msra.gmra.mxu0 %vm1378_vm3, %v6619_v17  ;;  %v5921_v28 = vpop.eup %5920 }
 0x362   : > { %5448 = vmatpush3.msra.mxu0 %v2281_v24  ;;  %5449 = vmatprep.mubr.msk.f32.mxu0 %vm6277_vm2, %v6276_v10  ;;  %v2280_v31 = vmul.f32 %v5921_v28, %v2093_v26  ;;  %v5111_v26 = vld [vmem:[%s7052_s28] ss:$0 sm:$0xff]  ;;  %s7063_s28 = sld [smem:[#allocation32_spill]] }
 0x363   : > { %5457 = vmatprep.subr.mxu0 %v6276_v10  ;;  %v5923_v32 = vpop.eup %5922 }
 0x364   : > { %5443 = vmatpush3.msra.mxu1 %v2280_v31  ;;  %v2285_v37 = vmul.f32 %v5923_v32, %v2114_v36 }
 0x365   : > { %v5925_v34 = vpop.eup %5924  ;;  %5450 = vmatmul.mubr.msk.f32.vlgmr.msra.gmra.mxu0 %vm1378_vm3, %v6616_v8  ;;  %5445 = vmatmul.mubr.msk.f32.vlgmr.msra.gmra.mxu1 %vm1378_vm3, %v6632_v23 }
 0x366   : > { %v2283_v17 = vmul.f32 %v5925_v34, %v2106_v33  ;;  %5452 = vmatprep.subr.mxu1 %v6276_v10  ;;  %5454 = vmatprep.mubr.msk.f32.mxu1 %vm6277_vm2, %v6276_v10 }
 0x367   : > { %5453 = vmatpush3.msra.mxu1 %v2282_v11  ;;  %5459 = vmatprep.mubr.msk.f32.mxu0 %vm6277_vm2, %v6276_v10 }
 0x368   : > { %5458 = vmatpush3.msra.mxu0 %v2283_v17  ;;  %5462 = vmatprep.subr.mxu1 %v6276_v10 }
 0x369   : > { %v5927_v8 = vpop.eup %5926  ;;  %5467 = vmatprep.subr.mxu0 %v6276_v10  ;;  %5460 = vmatmul.mubr.msk.f32.vlgmr.msra.gmra.mxu0 %vm1378_vm3, %v6645_v30  ;;  %v5811_v30 = vld [vmem:[%s6351_s30 + $0x38] sm:$0xff]  }
 0x36a   : > { %v5929_v23 = vpop.eup %5928  ;;  %v2284_v39 = vmul.f32 %v5927_v8, %v2109_v38  ;;  %5455 = vmatmul.mubr.msk.f32.vlgmr.msra.gmra.mxu1 %vm1378_vm3, %v6641_v29  ;;  %5468 = vmatpush3.msra.mxu0 %v2285_v37  ;;  %v5812_v29 = vld [vmem:[%s6346_s24 + $0x30] sm:$0xff]  }
 0x36b   : > { %5464 = vmatprep.mubr.msk.f32.mxu1 %vm6277_vm2, %v6276_v10  ;;  %5469 = vmatprep.mubr.msk.f32.mxu0 %vm6277_vm2, %v6276_v10  ;;  %v2286_v43 = vmul.f32 %v5929_v23, %v2117_v42 }
 0x36c   : > { %5463 = vmatpush3.msra.mxu1 %v2284_v39  ;;  %5477 = vmatprep.subr.bf16.mxu0 %v5810_v41 }
 0x36d   : > { %5472 = vmatprep.subr.mxu1 %v6276_v10  ;;  %5470 = vmatmul.mubr.msk.f32.vlgmr.msra.gmra.mxu0 %vm1378_vm3, %v6665_v13  ;;  %v5816_v13 = vld [vmem:[%s6346_s24 + $0x20] sm:$0xff]  }
 0x36e   : > { %5465 = vmatmul.mubr.msk.f32.vlgmr.msra.gmra.mxu1 %vm1378_vm3, %v6659_v14  ;;  %5478 = vmatpush3.bf16.msra.mxu0 %v5810_v41  ;;  %v5815_v14 = vld [vmem:[%s6351_s30 + $0x28] sm:$0xff]  }
 0x36f   : > { %5473 = vmatpush3.msra.mxu1 %v2286_v43  ;;  %5474 = vmatprep.mubr.msk.f32.mxu1 %vm6277_vm2, %v6276_v10 }
 0x370   : > { %5501 = vmatprep.subr.bf16.mxu1 %v5811_v30  ;;  %5479 = vmatprep.subr.bf16.mxu0 %v5812_v29 }
 0x372   : > { %5475 = vmatmul.mubr.msk.f32.vlgmr.msra.gmra.mxu1 %vm1378_vm3, %v6674_v40  ;;  %5480 = vmatpush3.bf16.msra.mxu0 %v5812_v29  ;;  %v5819_v40 = vld [vmem:[%s6351_s30 + $0x18] sm:$0xff]  }
 0x373   : > { %5502 = vmatpush3.bf16.msra.mxu1 %v5811_v30  ;;  %5481 = vmatprep.subr.bf16.mxu0 %v5814_v45 }
 0x374   : > { %5503 = vmatprep.subr.bf16.mxu1 %v5813_v44 }
 0x376   : > { %5482 = vmatpush3.bf16.msra.mxu0 %v5814_v45 }
 0x377   : > { %5504 = vmatpush3.bf16.msra.mxu1 %v5813_v44  ;;  %5483 = vmatprep.subr.bf16.mxu0 %v5816_v13 }
 0x378   : > { %5505 = vmatprep.subr.bf16.mxu1 %v5815_v14 }
 0x37a   : > { %5484 = vmatpush3.bf16.msra.mxu0 %v5816_v13 }
 0x37b   : > { %5506 = vmatpush3.bf16.msra.mxu1 %v5815_v14  ;;  %5485 = vmatprep.subr.bf16.mxu0 %v5818_v47 }
 0x37c   : > { %5507 = vmatprep.subr.bf16.mxu1 %v5817_v46 }
 0x37e   : > { %5486 = vmatpush3.bf16.msra.mxu0 %v5818_v47 }
 0x37f   : > { %5508 = vmatpush3.bf16.msra.mxu1 %v5817_v46  ;;  %5487 = vmatprep.subr.bf16.mxu0 %v5820_v48 }
 0x380   : > { %5509 = vmatprep.subr.bf16.mxu1 %v5819_v40 }
 0x382   : > { %5488 = vmatpush3.bf16.msra.mxu0 %v5820_v48 }
 0x383   : > { %5510 = vmatpush3.bf16.msra.mxu1 %v5819_v40  ;;  %5489 = vmatprep.subr.bf16.mxu0 %v5822_v50 }
 0x384   : > { %5511 = vmatprep.subr.bf16.mxu1 %v5821_v49 }
 0x386   : > { %5490 = vmatpush3.bf16.msra.mxu0 %v5822_v50 }
 0x387   : > { %5512 = vmatpush3.bf16.msra.mxu1 %v5821_v49  ;;  %5491 = vmatprep.subr.bf16.mxu0 %v5824_v52 }
 0x388   : > { %5513 = vmatprep.subr.bf16.mxu1 %v5823_v51 }
 0x38a   : > { %5492 = vmatpush3.bf16.msra.mxu0 %v5824_v52 }
 0x38b   : > { %5514 = vmatpush3.bf16.msra.mxu1 %v5823_v51  ;;  %5525 = vmatprep.subr.mxu0 %v6276_v10 }
 0x38c   : > { %5515 = vmatprep.subr.bf16.mxu1 %v5825_v53 }
 0x38f   : > { %5516 = vmatpush3.bf16.msra.mxu1 %v5825_v53 }
 0x390   : > { %5530 = vmatprep.subr.mxu1 %v6276_v10 }
 0x421   : > { %v2353_v62 = vpop.f32.mrf.mxu0 }
 0x423   : > { %v5441_v63 = vpop.f32.mrf.mxu0 }
 0x425   : > { %v2493_v0 = vpop.f32.mrf.mxu0  ;;  %v2423_v1 = vpop.f32.mrf.mxu1 }
 0x426   : > { %v2881_v2 = vpack.c.bf16 %v2423_v1, %v2353_v62 }
 0x427   : > { %v5451_v3 = vpop.f32.mrf.mxu0  ;;  %v5446_v4 = vpop.f32.mrf.mxu1 }
 0x428   : > { %5493 = vmatprep.mubr.bf16.mxu0 %v2881_v2  ;;  %5517 = vmatprep.mubr.bf16.mxu1 %v2881_v2 }
 0x429   : > { %v2633_v5 = vpop.f32.mrf.mxu0 }
 0x42a   : > { %v2563_v6 = vpop.f32.mrf.mxu1 }
 0x42b   : > { %v2882_v7 = vpack.c.bf16 %v2563_v6, %v2493_v0  ;;  %v5461_v9 = vpop.f32.mrf.mxu0 }
 0x42c   : > { %v5456_v15 = vpop.f32.mrf.mxu1 }
 0x42d   : > { %5494 = vmatmul.mubr.bf16.vlgmr.msra.gmra.mxu0 %v2882_v7  ;;  %5518 = vmatmul.mubr.bf16.vlgmr.msra.gmra.mxu1 %v2882_v7  ;;  %v2773_v16 = vpop.f32.mrf.mxu0 }
 0x42e   : > { %v2703_v18 = vpop.f32.mrf.mxu1 }
 0x42f   : > { %v2883_v19 = vpack.c.bf16 %v2703_v18, %v2633_v5  ;;  %v5471_v20 = vpop.f32.mrf.mxu0  ;;  %v3187_v5 = vpop.trf.xlu0 }
 0x430   : > { %v5466_v21 = vpop.f32.mrf.mxu1 }
 0x431   : > { %5521 = vmatprep.mubr.bf16.mxu1 %v2883_v19  ;;  %5497 = vmatprep.mubr.bf16.mxu0 %v2883_v19 }
 0x432   : > { %v2843_v22 = vpop.f32.mrf.mxu1 }
 0x433   : > { %v2884_v24 = vpack.c.bf16 %v2843_v22, %v2773_v16  ;;  %v5102_v16 = vld [vmem:[%s7053_s7] ss:$0 sm:$0xff]  ;;  %v3397_v22 = vpop.trf.xlu1  ;;  %s7064_s7 = sld [smem:[#allocation35_spill]] }
 0x434   : > { %v5476_v25 = vpop.f32.mrf.mxu1 }
 0x435   : > { %5522 = vmatmul.mubr.bf16.gmra.mxu1 %v2884_v24  ;;  %5498 = vmatmul.mubr.bf16.gmra.mxu0 %v2884_v24 }
 0x436   : > { %5527 = vmatprep.mubr.msk.f32.mxu0 %vm6277_vm2, %v6276_v10  ;;  %5532 = vmatprep.mubr.msk.f32.mxu1 %vm6277_vm2, %v6276_v10 }
 0x4ed   : > { %v5519_v27 = vpop.f32.mrf.mxu1  ;;  %v5495_v51 = vpop.f32.mrf.mxu0 }
 0x4ee   : > { %v3101_v28 = vadd.f32 %v5519_v27, %v5111_v26  ;;  %v2982_v24 = vadd.f32 %v5495_v51, %v5102_v16 }
 0x4ef   : > { %v3092_v12 = vpop.f32.mrf.mxu1  ;;  %v2973_v56 = vpop.f32.mrf.mxu0 }
 0x4f0   : > { %v3125_v31 = vsub.f32 0.0, %v3101_v28  ;;  %v3093_v32 = vadd.f32 %v5111_v26, %v3092_v12  ;;  %v2974_v19 = vadd.f32 %v5102_v16, %v2973_v56 }
 0x4f1   : > { %v5520_v33 = vpop.f32.mrf.mxu1  ;;  %v5496_v60 = vpop.f32.mrf.mxu0 }
 0x4f2   : > { %v3135_v34 = vmul.f32 1.442695, %v3125_v31  ;;  %v3123_v35 = vsub.f32 0.0, %v3093_v32  ;;  %v3104_v11 = vadd.f32 %v5520_v33, %v5111_v26  ;;  %v2985_v33 = vadd.f32 %v5496_v60, %v5102_v16 }
 0x4f3   : > { %v3095_v36 = vpop.f32.mrf.mxu1  ;;  %v2976_v2 = vpop.f32.mrf.mxu0 }
 0x4f4   : > { %5930 = vpow2.f32 %v3135_v34  ;;  %v3131_v17 = vmul.f32 1.442695, %v3123_v35  ;;  %v3126_v37 = vsub.f32 0.0, %v3104_v11  ;;  %v3096_v38 = vadd.f32 %v5111_v26, %v3095_v36  ;;  %v3502_v35 = vpop.trf.xlu1 }
 0x4f5   : > { %v5523_v8 = vpop.f32.mrf.mxu1  ;;  %v5499_v9 = vpop.f32.mrf.mxu0  ;;  %v2977_v12 = vadd.f32 %v5102_v16, %v2976_v2 }
 0x4f6   : > { %5932 = vpow2.f32 %v3131_v17  ;;  %v3137_v23 = vmul.f32 1.442695, %v3126_v37  ;;  %v3117_v39 = vadd.f32 %v5523_v8, %v5111_v26  ;;  %v3124_v41 = vsub.f32 0.0, %v3096_v38 }
 0x4f7   : > { %v3108_v42 = vpop.f32.mrf.mxu1  ;;  %v2989_v21 = vpop.f32.mrf.mxu0 }
 0x4f8   : > { %5934 = vpow2.f32 %v3137_v23  ;;  %v3129_v30 = vsub.f32 0.0, %v3117_v39  ;;  %v3109_v43 = vadd.f32 %v5111_v26, %v3108_v42  ;;  %v3133_v29 = vmul.f32 1.442695, %v3124_v41 }
 0x4f9   : > { %v5524_v44 = vpop.f32.mrf.mxu1  ;;  %v5500_v31 = vpop.f32.mrf.mxu0  ;;  %v2990_v36 = vadd.f32 %v5102_v16, %v2989_v21  ;;  %v2998_v23 = vadd.f32 %v5499_v9, %v5102_v16 }
 0x4fa   : > { %v3143_v45 = vmul.f32 1.442695, %v3129_v30  ;;  %v3127_v14 = vsub.f32 0.0, %v3109_v43  ;;  %v3120_v13 = vadd.f32 %v5524_v44, %v5111_v26  ;;  %5936 = vpow2.f32 %v3133_v29  ;;  %v3712_v43 = vpop.trf.xlu1 }
 0x4fb   : > { %v3111_v46 = vpop.f32.mrf.mxu1  ;;  %v2992_v38 = vpop.f32.mrf.mxu0 }
 0x4fc   : > { %5938 = vpow2.f32 %v3143_v45  ;;  %v3139_v47 = vmul.f32 1.442695, %v3127_v14  ;;  %v3130_v40 = vsub.f32 0.0, %v3120_v13  ;;  %v3112_v48 = vadd.f32 %v5111_v26, %v3111_v46  ;;  %v3292_v26 = vpop.trf.xlu0 }
 0x4fd   : > { %v2993_v42 = vadd.f32 %v5102_v16, %v2992_v38  ;;  %v3001_v14 = vadd.f32 %v5500_v31, %v5102_v16 }
 0x4fe   : > { %5940 = vpow2.f32 %v3139_v47  ;;  %v3145_v49 = vmul.f32 1.442695, %v3130_v40  ;;  %v3128_v50 = vsub.f32 0.0, %v3112_v48  ;;  %v3922_v46 = vpop.trf.xlu1 }
 0x500   : > { %5942 = vpow2.f32 %v3145_v49  ;;  %v3141_v52 = vmul.f32 1.442695, %v3128_v50  ;;  %v3607_v17 = vpop.trf.xlu0 }
 0x501   : > { %v5931_v53 = vpop.eup %5930 }
 0x502   : > { %v3149_v54 = vadd.f32 1.0, %v5931_v53  ;;  %5944 = vpow2.f32 %v3141_v52 }
 0x503   : > { %v5933_v55 = vpop.eup %5932 }
 0x504   : > { %v3147_v57 = vadd.f32 1.0, %v5933_v55  ;;  %5946 = vrcp.f32 %v3149_v54  ;;  %v3817_v45 = vpop.trf.xlu0 }
 0x505   : > { %v5935_v58 = vpop.eup %5934 }
 0x506   : > { %5948 = vrcp.f32 %v3147_v57  ;;  %v3150_v59 = vadd.f32 1.0, %v5935_v58 }
 0x507   : > { %v5937_v61 = vpop.eup %5936 }
 0x508   : > { %v3148_v63 = vadd.f32 1.0, %v5937_v61  ;;  %5950 = vrcp.f32 %v3150_v59 }
 0x509   : > { %v5939_v62 = vpop.eup %5938 }
 0x50a   : > { %v3153_v0 = vadd.f32 1.0, %v5939_v62  ;;  %5952 = vrcp.f32 %v3148_v63 }
 0x50b   : > { %v5941_v1 = vpop.eup %5940 }
 0x50c   : > { %v3151_v3 = vadd.f32 1.0, %v5941_v1  ;;  %5954 = vrcp.f32 %v3153_v0 }
 0x50d   : > { %v5943_v4 = vpop.eup %5942 }
 0x50e   : > { %5956 = vrcp.f32 %v3151_v3  ;;  %v3154_v7 = vadd.f32 1.0, %v5943_v4 }
 0x50f   : > { %v5945_v6 = vpop.eup %5944 }
 0x510   : > { %v3152_v15 = vadd.f32 1.0, %v5945_v6 }
 0x511   : > { %v5947_v18 = vpop.eup %5946 }
 0x512   : > { %5958 = vrcp.f32 %v3152_v15  ;;  %v3165_v27 = vmul.f32 %v5947_v18, %v2982_v24 }
 0x513   : > { %v5949_v20 = vpop.eup %5948  ;;  %5960 = vrcp.f32 %v3154_v7 }
 0x514   : > { %v3163_v25 = vmul.f32 %v5949_v20, %v2974_v19 }
 0x515   : > { %v5951_v28 = vpop.eup %5950 }
 0x516   : > { %5526 = vmatpush3.msra.mxu0 %v3163_v25  ;;  %v3166_v8 = vmul.f32 %v5951_v28, %v2985_v33 }
 0x517   : > { %5535 = vmatprep.subr.mxu0 %v6276_v10  ;;  %5528 = vmatmul.mubr.msk.f32.vlgmr.msra.gmra.mxu0 %vm1378_vm3, %v3187_v5  ;;  %v5953_v32 = vpop.eup %5952 }
 0x518   : > { %5536 = vmatpush3.msra.mxu0 %v3165_v27  ;;  %5537 = vmatprep.mubr.msk.f32.mxu0 %vm6277_vm2, %v6276_v10  ;;  %v3164_v34 = vmul.f32 %v5953_v32, %v2977_v12 }
 0x519   : > { %5545 = vmatprep.subr.mxu0 %v6276_v10  ;;  %v5955_v11 = vpop.eup %5954 }
 0x51a   : > { %5531 = vmatpush3.msra.mxu1 %v3164_v34  ;;  %v3169_v41 = vmul.f32 %v5955_v11, %v2998_v23 }
 0x51b   : > { %v5957_v37 = vpop.eup %5956  ;;  %5538 = vmatmul.mubr.msk.f32.vlgmr.msra.gmra.mxu0 %vm1378_vm3, %v3397_v22  ;;  %5533 = vmatmul.mubr.msk.f32.vlgmr.msra.gmra.mxu1 %vm1378_vm3, %v3292_v26 }
 0x51c   : > { %v3167_v39 = vmul.f32 %v5957_v37, %v2990_v36  ;;  %5540 = vmatprep.subr.mxu1 %v6276_v10  ;;  %5542 = vmatprep.mubr.msk.f32.mxu1 %vm6277_vm2, %v6276_v10 }
 0x51d   : > { %5541 = vmatpush3.msra.mxu1 %v3166_v8  ;;  %5547 = vmatprep.mubr.msk.f32.mxu0 %vm6277_vm2, %v6276_v10 }
 0x51e   : > { %5546 = vmatpush3.msra.mxu0 %v3167_v39  ;;  %5550 = vmatprep.subr.mxu1 %v6276_v10 }
 0x51f   : > { %v5959_v30 = vpop.eup %5958  ;;  %5555 = vmatprep.subr.mxu0 %v6276_v10  ;;  %5548 = vmatmul.mubr.msk.f32.vlgmr.msra.gmra.mxu0 %vm1378_vm3, %v3607_v17 }
 0x520   : > { %v5961_v29 = vpop.eup %5960  ;;  %v3168_v44 = vmul.f32 %v5959_v30, %v2993_v42  ;;  %5543 = vmatmul.mubr.msk.f32.vlgmr.msra.gmra.mxu1 %vm1378_vm3, %v3502_v35  ;;  %5556 = vmatpush3.msra.mxu0 %v3169_v41 }
 0x521   : > { %5552 = vmatprep.mubr.msk.f32.mxu1 %vm6277_vm2, %v6276_v10  ;;  %5557 = vmatprep.mubr.msk.f32.mxu0 %vm6277_vm2, %v6276_v10  ;;  %v3170_v13 = vmul.f32 %v5961_v29, %v3001_v14 }
 0x522   : > { %5551 = vmatpush3.msra.mxu1 %v3168_v44 }
 0x523   : > { %5560 = vmatprep.subr.mxu1 %v6276_v10  ;;  %5558 = vmatmul.mubr.msk.f32.vlgmr.msra.gmra.mxu0 %vm1378_vm3, %v3817_v45 }
 0x524   : > { %5553 = vmatmul.mubr.msk.f32.vlgmr.msra.gmra.mxu1 %vm1378_vm3, %v3712_v43 }
 0x525   : > { %5561 = vmatpush3.msra.mxu1 %v3170_v13  ;;  %5562 = vmatprep.mubr.msk.f32.mxu1 %vm6277_vm2, %v6276_v10 }
 0x528   : > { %5563 = vmatmul.mubr.msk.f32.vlgmr.msra.gmra.mxu1 %vm1378_vm3, %v3922_v46 }
 0x5d7   : > { %v3272_v47 = vpop.f32.mrf.mxu0 }
 0x5d8   : > { %v4041_v49 = vrot.slane %v3272_v47, 1  ;;  %v4058_v50 = vrot.slane %v3272_v47, 2  ;;  %v4075_v51 = vrot.slane %v3272_v47, 3 }
 0x5d9   : > { %v5529_v40 = vpop.f32.mrf.mxu0 }
 0x5db   : > { %v3482_v48 = vpop.f32.mrf.mxu0  ;;  %v3377_v52 = vpop.f32.mrf.mxu1 }
 0x5dc   : > { %v4022_v53 = vrot.slane %v3482_v48, 6  ;;  %v4019_v54 = vrot.slane %v3377_v52, 7  ;;  %v4059_v55 = vrot.slane %v3377_v52, 1  ;;  %v4076_v56 = vrot.slane %v3377_v52, 2 }
 0x5dd   : > { %v4078_v57 = vrot.slane %v3482_v48, 1  ;;  %v5539_v58 = vpop.f32.mrf.mxu0  ;;  %v5534_v59 = vpop.f32.mrf.mxu1  ;;  %v4043_v60 = vrot.slane %v3482_v48, 7  ;;  %v4042_v62 = vsel %vm4020_vm4, %v3377_v52, %v4041_v49 }
 0x5de   : > { %v4021_v61 = vsel %vm4020_vm4, %v4019_v54, %v3272_v47  ;;  %v4060_v63 = vsel %vm4020_vm4, %v4059_v55, %v4058_v50  ;;  %v4077_v0 = vsel %vm4020_vm4, %v4076_v56, %v4075_v51 }
 0x5df   : > { %v3692_v1 = vpop.f32.mrf.mxu0  ;;  %v4024_v2 = vsel %vm4023_vm5, %v4022_v53, %v4021_v61  ;;  %v4079_v9 = vsel %vm4023_vm5, %v4078_v57, %v4077_v0  ;;  %v4044_v16 = vsel %vm4023_vm5, %v4043_v60, %v4042_v62  ;;  %v4061_v18 = vsel %vm4023_vm5, %v3482_v48, %v4060_v63  ;;  %v5826_v63 = vld [vmem:[%s7054_s2 + $0x38] sm:$0xff]  }
 0x5e0   : > { %v3587_v3 = vpop.f32.mrf.mxu1  ;;  %v4028_v4 = vrot.slane %v3692_v1, 4  ;;  %v4047_v20 = vrot.slane %v3692_v1, 5  ;;  %v4064_v21 = vrot.slane %v3692_v1, 6  ;;  %v4081_v12 = vrot.slane %v3692_v1, 7  ;;  %v5827_v0 = vld [vmem:[%s7055_s1 + $0x38] sm:$0xff]  }
 0x5e1   : > { %v4025_v5 = vrot.slane %v3587_v3, 5  ;;  %v4045_v6 = vrot.slane %v3587_v3, 6  ;;  %v4062_v7 = vrot.slane %v3587_v3, 7  ;;  %v5549_v15 = vpop.f32.mrf.mxu0  ;;  %v4080_v27 = vsel %vm4026_vm6, %v3587_v3, %v4079_v9  ;;  %v5829_v3 = vld [vmem:[%s7055_s1 + $0x30] sm:$0xff]   ;;  %v5834_v9 = vld [vmem:[%s7054_s2 + $0x18] sm:$0xff]  }
 0x5e2   : > { %v5544_v19 = vpop.f32.mrf.mxu1  ;;  %v4082_v14 = vsel %vm4029_vm7, %v4081_v12, %v4080_v27  ;;  %v6281_v1 = vmov 0   ;;  %v5835_v15 = vld [vmem:[%s7055_s1 + $0x18] sm:$0xff]   ;;  %v5839_v12 = vld [vmem:[%s7055_s1 + $0x8] sm:$0xff]  }
 0x5e3   : > { %v4027_v22 = vsel %vm4026_vm6, %v4025_v5, %v4024_v2  ;;  %v4046_v24 = vsel %vm4026_vm6, %v4045_v6, %v4044_v16  ;;  %v4063_v25 = vsel %vm4026_vm6, %v4062_v7, %v4061_v18  ;;  %v3902_v26 = vpop.f32.mrf.mxu0  ;;  %4287 = vmatprep.subr.bf16.mxu0 %v6281_v1  ;;  %4411 = vmatprep.subr.bf16.mxu1 %v6281_v1  ;;  %v5828_v2 = vld [vmem:[%s7054_s2 + $0x30] sm:$0xff]   ;;  %v5831_v5 = vld [vmem:[%s7055_s1 + $0x28] sm:$0xff]   ;;  %v5832_v6 = vld [vmem:[%s7054_s2 + $0x20] sm:$0xff]  }
 0x5e4   : > { %v4030_v28 = vsel %vm4029_vm7, %v4028_v4, %v4027_v22  ;;  %v3797_v31 = vpop.f32.mrf.mxu1  ;;  %v4034_v32 = vrot.slane %v3902_v26, 2  ;;  %v4051_v11 = vrot.slane %v3902_v26, 3  ;;  %v4068_v38 = vrot.slane %v3902_v26, 4  ;;  %4288 = vmatpush1.bf16.msra.mxu0 %v5826_v63  ;;  %4412 = vmatpush1.bf16.msra.mxu1 %v5827_v0  ;;  %v5830_v4 = vld [vmem:[%s7054_s2 + $0x28] sm:$0xff]   ;;  %v5833_v7 = vld [vmem:[%s7055_s1 + $0x20] sm:$0xff]   ;;  %v5836_v16 = vld [vmem:[%s7054_s2 + $0x10] sm:$0xff]  }
 0x5e5   : > { %v4031_v33 = vrot.slane %v3797_v31, 3  ;;  %v4049_v34 = vrot.slane %v3797_v31, 4  ;;  %v4066_v35 = vrot.slane %v3797_v31, 5  ;;  %v5559_v36 = vpop.f32.mrf.mxu0  ;;  %v4083_v17 = vrot.slane %v3797_v31, 6  ;;  %4289 = vmatprep.subr.bf16.mxu0 %v6281_v1  ;;  %4413 = vmatprep.subr.bf16.mxu1 %v6281_v1  ;;  %v5837_v18 = vld [vmem:[%s7055_s1 + $0x10] sm:$0xff]   ;;  %v5840_v31 = vld [vmem:[%s7054_s2] sm:$0xff]  }
 0x5e6   : > { %v5554_v37 = vpop.f32.mrf.mxu1  ;;  %v4065_v8 = vsel %vm4029_vm7, %v4064_v21, %v4063_v25  ;;  %v4048_v23 = vsel %vm4029_vm7, %v4047_v20, %v4046_v24  ;;  %v4085_v13 = vrot.slane %v3902_v26, 5  ;;  %v5844_v36 = vld [vmem:[%s7054_s2 + $0x58] sm:$0xff]  }
 0x5e7   : > { %v4067_v39 = vsel %vm4032_vm8, %v4066_v35, %v4065_v8  ;;  %v4050_v41 = vsel %vm4032_vm8, %v4049_v34, %v4048_v23  ;;  %v4033_v42 = vsel %vm4032_vm8, %v4031_v33, %v4030_v28  ;;  %v4084_v40 = vsel %vm4032_vm8, %v4083_v17, %v4082_v14  ;;  %v5838_v28 = vld [vmem:[%s7054_s2 + $0x8] sm:$0xff]   ;;  %v5842_v33 = vld [vmem:[%s7054_s2 + $0x60] ss:$0 sps:$4 sm:$0xff]   ;;  %v5845_v17 = vld [vmem:[%s7055_s1 + $0x58] sm:$0xff]  }
 0x5e8   : > { %v4007_v30 = vpop.f32.mrf.mxu1  ;;  %v4036_v43 = vsel %vm4035_vm9, %v4034_v32, %v4033_v42  ;;  %v4069_v46 = vsel %vm4035_vm9, %v4068_v38, %v4067_v39  ;;  %v4052_v47 = vsel %vm4035_vm9, %v4051_v11, %v4050_v41  ;;  %v4086_v53 = vsel %vm4035_vm9, %v4085_v13, %v4084_v40  ;;  %4290 = vmatpush1.bf16.msra.mxu0 %v5828_v2  ;;  %v5841_v32 = vld [vmem:[%s7055_s1] sm:$0xff]   ;;  %v5846_v37 = vld [vmem:[%s7054_s2 + $0x50] sm:$0xff]   ;;  %v5848_v8 = vld [vmem:[%s7054_s2 + $0x48] sm:$0xff]  }
 0x5e9   : > { %v4037_v29 = vrot.slane %v4007_v30, 1  ;;  %v4053_v44 = vrot.slane %v4007_v30, 2  ;;  %v4070_v45 = vrot.slane %v4007_v30, 3  ;;  %v4087_v49 = vrot.slane %v4007_v30, 4  ;;  %4414 = vmatpush1.bf16.msra.mxu1 %v5829_v3  ;;  %4291 = vmatprep.subr.bf16.mxu0 %v6281_v1  ;;  %v5843_v34 = vld [vmem:[%s7055_s1 + $0x60] ss:$0 sps:$4 sm:$0xff]  }
 0x5ea   : > { %v5564_v48 = vpop.f32.mrf.mxu1  ;;  %4415 = vmatprep.subr.bf16.mxu1 %v6281_v1  ;;  %v4285_v35 = vsel %vm1178_vm0, %v5842_v33, 0  ;;  %v4409_v11 = vsel %vm1178_vm0, %v5843_v34, 0  ;;  %v5847_v38 = vld [vmem:[%s7055_s1 + $0x50] sm:$0xff]   ;;  %v5849_v23 = vld [vmem:[%s7055_s1 + $0x48] sm:$0xff]   ;;  %v5850_v39 = vld [vmem:[%s7054_s2 + $0x40] sm:$0xff]  }
 0x5eb   : > { %v4071_v50 = vsel %vm4038_vm10, %v4070_v45, %v4069_v46  ;;  %v4054_v51 = vsel %vm4038_vm10, %v4053_v44, %v4052_v47  ;;  %v4039_v52 = vsel %vm4038_vm10, %v4037_v29, %v4036_v43  ;;  %v4088_v54 = vsel %vm4038_vm10, %v4087_v49, %v4086_v53  ;;  %v5851_v41 = vld [vmem:[%s7055_s1 + $0x40] sm:$0xff]   ;;  %v5855_v33 = vld [vmem:[#allocation13 + $0x28] sm:$0xff]  }
 0x5ec   : > { %4072 = vrot.lane.b32.xlu1 %v4071_v50, %s6278_s16  ;;  %4055 = vrot.lane.b32.xlu0 %v4054_v51, %s6279_s15  ;;  %v4121_v29 = vlaneseq  ;;  %v4098_v13 = vld [vmem:[%s7056_s11] sm:$0x3]  ;;  %s7065_s16 = sld [smem:[#allocation34_spill]]  ;;  %s1076_s11 = sand.u32 1, %s6226_s23  }
 0x5ed   : > { %4292 = vmatpush1.bf16.msra.mxu0 %v5830_v4  ;;  %4416 = vmatpush1.bf16.msra.mxu1 %v5831_v5  ;;  %v4099_v46 = vld [vmem:[%s7057_s17] sm:$0x3]  ;;  %s7066_s15 = sld [smem:[#allocation36_spill]]  ;;  %s5043_s17 = sshll.u32 %s1076_s11, 3 }
 0x5ee   : > { %4293 = vmatprep.subr.bf16.mxu0 %v6281_v1  ;;  %4417 = vmatprep.subr.bf16.mxu1 %v6281_v1  ;;  %v4122_v44 = vshrl.u32 %v4121_v29, 7  ;;  %v5856_v34 = vld [vmem:[%s7061_s18 + $0x20] sm:$0xff]  }
 0x5ef   : > { %v5158_v29 = vld [vmem:[%s7062_s10] ss:$0 sm:$0xff] }
 0x5f0   : > { %4089 = vrot.lane.b32.xlu1 %v4088_v54, %s6280_s26  ;;  %v4127_v45 = vsub.s32 1, %v4122_v44  ;;  %v4123_v14 = vsub.s32 0, %v4122_v44  ;;  %s7067_s26 = sld [smem:[#allocation42_spill]] }
 0x5f1   : > { %4294 = vmatpush1.bf16.msra.mxu0 %v5832_v6  ;;  %4418 = vmatpush1.bf16.msra.mxu1 %v5833_v7 }
 0x5f2   : > { %4295 = vmatprep.subr.bf16.mxu0 %v6281_v1  ;;  %4419 = vmatprep.subr.bf16.mxu1 %v6281_v1  ;;  %v4128_v47 = vrot.slane %v4098_v13, %v4127_v45  ;;  %v4124_v40 = vrot.slane %v4098_v13, %v4123_v14  ;;  %v4141_v50 = vrot.slane %v4099_v46, %v4127_v45  ;;  %v5159_v45 = vld [vmem:[%s7063_s28] ss:$0 sm:$0xff]  ;;  %s4829_s28 = scalar_lea.sflag [#allocation4], %s1076_s11 }
 0x5f5   : > { %4296 = vmatpush1.bf16.msra.mxu0 %v5834_v9  ;;  %4420 = vmatpush1.bf16.msra.mxu1 %v5835_v15  ;;  %v5128_v15 = vld [vmem:[%s7059_s19] ss:$0 sm:$0xff]  ;;  %s1078_s19 = scalar_lea.vmem [#allocation14], %s5043_s17 }
 0x5f6   : > { %4297 = vmatprep.subr.bf16.mxu0 %v6281_v1  ;;  %4421 = vmatprep.subr.bf16.mxu1 %v6281_v1  ;;  %p7068_p1 = scmp.ne.s32.totalorder %s7067_s26, 0 }
 0x5f9   : > { %4298 = vmatpush1.bf16.msra.mxu0 %v5836_v16  ;;  %4422 = vmatpush1.bf16.msra.mxu1 %v5837_v18 }
 0x5fa   : > { %4299 = vmatprep.subr.bf16.mxu0 %v6281_v1  ;;  %4423 = vmatprep.subr.bf16.mxu1 %v6281_v1 }
 0x5fd   : > { %4300 = vmatpush1.bf16.msra.mxu0 %v5838_v28  ;;  %4424 = vmatpush1.bf16.msra.mxu1 %v5839_v12 }
 0x5fe   : > { %4301 = vmatprep.subr.bf16.mxu0 %v6281_v1  ;;  %4425 = vmatprep.subr.bf16.mxu1 %v6281_v1 }
 0x601   : > { %4302 = vmatpush1.bf16.msra.mxu0 %v5840_v31  ;;  %4426 = vmatpush1.bf16.msra.mxu1 %v5841_v32  ;;  %v5854_v32 = vld [vmem:[%s7061_s18 + $0x28] sm:$0xff]  }
 0x602   : > { %4309 = vmatprep.subr.bf16.mxu0 %v6281_v1  ;;  %4433 = vmatprep.subr.bf16.mxu1 %v6281_v1 }
 0x605   : > { %4310 = vmatpush2.bf16.msra.mxu0 %v4285_v35  ;;  %4434 = vmatpush2.bf16.msra.mxu1 %v4409_v11  ;;  %v5857_v35 = vld [vmem:[#allocation13 + $0x20] sm:$0xff]   ;;  %v5858_v11 = vld [vmem:[%s7061_s18 + $0x18] sm:$0xff]  }
 0x606   : > { %4311 = vmatprep.subr.bf16.mxu0 %v6281_v1  ;;  %4435 = vmatprep.subr.bf16.mxu1 %v6281_v1 }
 0x609   : > { %4312 = vmatpush2.bf16.msra.mxu0 %v5844_v36  ;;  %4436 = vmatpush2.bf16.msra.mxu1 %v5845_v17  ;;  %v5859_v36 = vld [vmem:[#allocation13 + $0x18] sm:$0xff]   ;;  %v5860_v17 = vld [vmem:[%s7061_s18 + $0x10] sm:$0xff]  }
 0x60a   : > { %4313 = vmatprep.subr.bf16.mxu0 %v6281_v1  ;;  %4437 = vmatprep.subr.bf16.mxu1 %v6281_v1 }
 0x60d   : > { %4314 = vmatpush2.bf16.msra.mxu0 %v5846_v37  ;;  %4438 = vmatpush2.bf16.msra.mxu1 %v5847_v38  ;;  %v5861_v37 = vld [vmem:[#allocation13 + $0x10] sm:$0xff]   ;;  %v5862_v38 = vld [vmem:[%s7061_s18 + $0x8] sm:$0xff]  }
 0x60e   : > { %4315 = vmatprep.subr.bf16.mxu0 %v6281_v1  ;;  %4439 = vmatprep.subr.bf16.mxu1 %v6281_v1 }
 0x611   : > { %4316 = vmatpush2.bf16.msra.mxu0 %v5848_v8  ;;  %4440 = vmatpush2.bf16.msra.mxu1 %v5849_v23  ;;  %v5863_v8 = vld [vmem:[#allocation13 + $0x8] sm:$0xff]   ;;  %v5864_v23 = vld [vmem:[%s7061_s18] sm:$0xff]  }
 0x612   : > { %4317 = vmatprep.subr.bf16.mxu0 %v6281_v1  ;;  %4441 = vmatprep.subr.bf16.mxu1 %v6281_v1 }
 0x615   : > { %4318 = vmatpush2.bf16.msra.mxu0 %v5850_v39  ;;  %4442 = vmatpush2.bf16.msra.mxu1 %v5851_v41  ;;  %v5865_v39 = vld [vmem:[#allocation13] sm:$0xff]  }
 0x616   : > { %5565 = vmatprep.subr.bf16.mxu0 %v6276_v10  ;;  %5583 = vmatprep.subr.bf16.mxu1 %v6276_v10 }
 0x65e   : > { %v4073_v55 = vpop.permute.xlu1 %4072  ;;  %v4056_v56 = vpop.permute.xlu0 %4055 }
 0x65f   : > { %v4093_v57 = vsel %vm4092_vm11, %v4039_v52, %v4056_v56  ;;  %v4137_v52 = vrot.slane %v4099_v46, %v4123_v14 }
 0x660   : > { %v4095_v60 = vsel %vm4094_vm13, %v4093_v57, %v4073_v55 }
 0x662   : > { %v4090_v58 = vpop.permute.xlu1 %4089 }
 0x663   : > { %v4097_v59 = vsel %vm4096_vm12, %v4073_v55, %v4090_v58 }
 0x664   : > { %v4101_v61 = vsel %vm4100_vm14, %v4097_v59, 0.0 }
 0x665   : > { %v4102_v62 = vadd.f32 %v4101_v61, %v4095_v60 }
 0x667   : > { %4103 = vadd.xlane.f32.xlu1 %v4102_v62 }
 0x6f0   : > { %v4104_v19 = vpop.xlane.xlu1 %4103 }
 0x6f1   : > { %v4106_v20 = vmul.f32 0.005, %v4104_v19 }
 0x6f3   : > { %v6842_v21 = vsub.f32 %v4095_v60, %v4106_v20  ;;  %v6844_v22 = vsub.f32 %v4097_v59, %v4106_v20  ;;  %v5143_v59 = vld [vmem:[%s7058_s21] ss:$0 sm:$0xff]  ;;  %s5184_s21 = sshll.u32 %s6469_s0, 7 }
 0x6f4   : > { %s6958_s10 = scalar_lea.hbm %s6446_s20, %s5184_s21 }
 0x6f5   : > { %v4109_v24 = vmul.f32 %v6842_v21, %v6842_v21  ;;  %v4110_v25 = vmul.f32 %v6844_v22, %v6844_v22 }
 0x6f7   : > { %v4111_v26 = vsel %vm4100_vm14, %v4110_v25, 0.0 }
 0x6f8   : > { %v4112_v27 = vadd.f32 %v4111_v26, %v4109_v24 }
 0x6fa   : > { %4113 = vadd.xlane.f32.xlu0 %v4112_v27 }
 0x783   : > { %v4114_v42 = vpop.xlane.xlu0 %4113 }
 0x784   : > { %v4115_v30 = vmul.f32 0.005, %v4114_v42 }
 0x786   : > { %v4116_v43 = vadd.f32 1e-05, %v4115_v30 }
 0x788   : > { %5962 = vrsqrt.f32 %v4116_v43 }
 0x795   : > { %v5963_v48 = vpop.eup %5962 }
 0x796   : > { %v4119_v49 = vmul.f32 %v5963_v48, %v6844_v22  ;;  %v4118_v51 = vmul.f32 %v5963_v48, %v6842_v21  ;;  %v5852_v21 = vld [vmem:[%s7060_s22 + $0x30] ss:$0 sps:$4 sm:$0x33]   ;;  %s4842_s22 = sshll.u32 %s1078_s19, 4  ;;  %s4843_s22 = int_to_ptr.vmem [resolvable:$true] %s4842_s22 }
 0x797   : > { %v5853_v22 = vld [vmem:[#allocation13 + $0x30] ss:$0 sps:$4 sm:$0x33]   ;;  %v4566_v24 = vsel %vm4564_vm15, %v5852_v21, 0  ;;  %v4735_v21 = vld [vmem:[%s6436_s4 + $0x20] sm:$0xff] }
 0x798   : > { %v4132_v53 = vmul.f32 %v4128_v47, %v4119_v49  ;;  %v4131_v54 = vmul.f32 %v4124_v40, %v4118_v51  ;;  %v4654_v25 = vsel %vm4564_vm15, %v5853_v22, 0  ;;  %v5169_v47 = vld [vmem:[%s7064_s7] ss:$0 sm:$0xff]  ;;  %v4734_v22 = vld [vmem:[%s6436_s4 + $0x18] sm:$0xff]  ;;  %s6158_s7 = scalar_lea.vmem %s4843_s22, 128 }
 0x799   : > { %p6159_p9 = scmp.ne.s32.totalorder %s4843_s22, %s6158_s7 }
 0x79a   : > { %v4145_v55 = vadd.f32 %v4141_v50, %v4132_v53  ;;  %v4144_v56 = vadd.f32 %v4137_v52, %v4131_v54 }
 0x79b   : > { %p6160_p3 = pnand %p6159_p9, %p7068_p1 }
 0x79c   : > { %v4199_v57 = vpack.c.bf16 %v4145_v55, %v4145_v55  ;;  %v4198_v58 = vpack.c.bf16 %v4144_v56, %v4144_v56 }
 0x79d   : > { %p6161_p2 = pneg %p6160_p3 }
 0x79e   : > { %5142 = vmatprep.mubr.msk.bf16.mxu0 %vm4100_vm14, %v4199_v57  ;;  %5157 = vmatprep.mubr.msk.bf16.mxu1 %vm4100_vm14, %v4199_v57 }
 0x79f   : > { %4320 = vmatmul.mubr.bf16.vlgmr.msra.gmra.mxu0 %v4198_v58  ;;  %4444 = vmatmul.mubr.bf16.vlgmr.msra.gmra.mxu1 %v4198_v58 }
 0x7a0   : > { %5579 = vmatprep.mubr.msk.bf16.mxu0 %vm6277_vm2, %v6276_v10  ;;  %5597 = vmatprep.mubr.msk.bf16.mxu1 %vm6277_vm2, %v6276_v10 }
 0x7a1   : > { %5566 = vmatpush3.bf16.msra.mxu0 %v4566_v24  ;;  %5584 = vmatpush3.bf16.msra.mxu1 %v4654_v25  ;;  %v4733_v24 = vld [vmem:[%s6436_s4 + $0x10] sm:$0xff]  ;;  %v4732_v25 = vld [vmem:[%s6436_s4 + $0x8] sm:$0xff] }
 0x7a2   : > { %5567 = vmatprep.subr.bf16.mxu0 %v6276_v10  ;;  %5585 = vmatprep.subr.bf16.mxu1 %v6276_v10 }
 0x7a5   : > { %5568 = vmatpush3.bf16.msra.mxu0 %v5854_v32  ;;  %5586 = vmatpush3.bf16.msra.mxu1 %v5855_v33  ;;  %v5178_v32 = vld [vmem:[%s7066_s15] ss:$0 sm:$0xff] }
 0x7a6   : > { %5569 = vmatprep.subr.bf16.mxu0 %v6276_v10  ;;  %5587 = vmatprep.subr.bf16.mxu1 %v6276_v10 }
 0x7a9   : > { %5570 = vmatpush3.bf16.msra.mxu0 %v5856_v34  ;;  %5588 = vmatpush3.bf16.msra.mxu1 %v5857_v35  ;;  %v5179_v34 = vld [vmem:[%s6431_s12] ss:$0 sm:$0xff] }
 0x7aa   : > { %5571 = vmatprep.subr.bf16.mxu0 %v6276_v10  ;;  %5589 = vmatprep.subr.bf16.mxu1 %v6276_v10 }
 0x7ad   : > { %5572 = vmatpush3.bf16.msra.mxu0 %v5858_v11  ;;  %5590 = vmatpush3.bf16.msra.mxu1 %v5859_v36  ;;  %v5180_v36 = vld [vmem:[%s6441_s6] ss:$0 sm:$0xff] }
 0x7ae   : > { %5573 = vmatprep.subr.bf16.mxu0 %v6276_v10  ;;  %5591 = vmatprep.subr.bf16.mxu1 %v6276_v10 }
 0x7b1   : > { %5574 = vmatpush3.bf16.msra.mxu0 %v5860_v17  ;;  %5592 = vmatpush3.bf16.msra.mxu1 %v5861_v37 }
 0x7b2   : > { %5575 = vmatprep.subr.bf16.mxu0 %v6276_v10  ;;  %5593 = vmatprep.subr.bf16.mxu1 %v6276_v10 }
 0x7b5   : > { %5576 = vmatpush3.bf16.msra.mxu0 %v5862_v38  ;;  %5594 = vmatpush3.bf16.msra.mxu1 %v5863_v8 }
 0x7b6   : > { %5577 = vmatprep.subr.bf16.mxu0 %v6276_v10  ;;  %5595 = vmatprep.subr.bf16.mxu1 %v6276_v10 }
 0x7b9   : > { %5578 = vmatpush3.bf16.msra.mxu0 %v5864_v23  ;;  %5596 = vmatpush3.bf16.msra.mxu1 %v5865_v39 }
 0x7ba   : > { %5601 = vmatprep.subr.mxu0 %v6276_v10 }
 0x85f   : > { %v4321_v60 = vpop.f32.mrf.mxu0  ;;  %v4445_v61 = vpop.f32.mrf.mxu1 }
 0x860   : > { %v4446_v62 = vadd.f32 %v5143_v59, %v4445_v61  ;;  %v4322_v16 = vadd.f32 %v5128_v15, %v4321_v60  ;;  %v5160_v60 = vld [vmem:[%s7065_s16] ss:$0 sm:$0xff]  ;;  %v4740_v15 = vld [vmem:[%s6436_s4 + $0x48] sm:$0xff]  ;;  %s6282_s16 = smov [#allocation14]  }
 0x861   : > { %v4323_v63 = vpop.f32.mrf.mxu0  ;;  %v4447_v0 = vpop.f32.mrf.mxu1  ;;  %s6162_s15 = sshll.u32 %s6282_s16, 4  ;;  %s6163_s15 = int_to_ptr.vmem [resolvable:$false] %s6162_s15 }
 0x862   : > { %v4451_v1 = vsub.f32 0.0, %v4446_v62  ;;  %s6164_s1 = scalar_lea.vmem %s6163_s15, 256  ;;  %p6165_p4 = scmp.lt.s32.totalorder %s4843_s22, %s6163_s15 }
 0x863   : > { %v4324_v2 = vpop.f32.mrf.mxu0  ;;  %v4448_v3 = vpop.f32.mrf.mxu1  ;;  %p6166_p7 = scmp.lt.s32.totalorder %s6164_s1, %s6158_s7 }
 0x864   : > { %v4452_v4 = vmul.f32 1.442695, %v4451_v1  ;;  %v4743_v1 = vld [vmem:[%s6436_s4 + $0x60] sm:$0xf] }
 0x865   : > { %v4325_v5 = vpop.f32.mrf.mxu0  ;;  %v4449_v6 = vpop.f32.mrf.mxu1  ;;  %p6167_p13 = por %p6166_p7, %p6165_p4 }
 0x866   : > { %5964 = vpow2.f32 %v4452_v4 }
 0x867   : > { %p6168_p5 = pnand %p6167_p13, %p6161_p2 }
 0x873   : > { %v5965_v7 = vpop.eup %5964 }
 0x874   : > { %v4454_v9 = vadd.f32 1.0, %v5965_v7  ;;  %v4742_v7 = vld [vmem:[%s6436_s4 + $0x58] sm:$0xff] }
 0x876   : > { %5966 = vrcp.f32 %v4454_v9  ;;  %v4741_v9 = vld [vmem:[%s6436_s4 + $0x50] sm:$0xff] }
 0x883   : > { %v5967_v18 = vpop.eup %5966 }
 0x884   : > { %v4456_v19 = vmul.f32 %v5967_v18, %v4322_v16  ;;  %v4739_v16 = vld [vmem:[%s6436_s4 + $0x40] sm:$0xff]  ;;  %v4738_v18 = vld [vmem:[%s6436_s4 + $0x38] sm:$0xff] }
 0x886   : > { %v4459_v20 = vsel %vm4094_vm13, %v4456_v19, 0.0 }
 0x887   : > { %4460 = vadd.xlane.f32.xlu1 %v4459_v20  ;;  %v4736_v20 = vld [vmem:[%s6436_s4 + $0x28] sm:$0xff] }
 0x910   : > { %v4461_v26 = vpop.xlane.xlu1 %4460 }
 0x911   : > { %v4463_v27 = vmul.f32 0.01, %v4461_v26  ;;  %v4731_v26 = vld [vmem:[%s6436_s4] sm:$0xff] }
 0x913   : > { %v4464_v28 = vsub.f32 %v4456_v19, %v4463_v27  ;;  %v4737_v19 = vld [vmem:[%s6436_s4 + $0x30] sm:$0xff] }
 0x915   : > { %v4465_v12 = vmul.f32 %v4464_v28, %v4464_v28 }
 0x917   : > { %v4466_v31 = vsel %vm4094_vm13, %v4465_v12, 0.0 }
 0x918   : > { %4467 = vadd.xlane.f32.xlu0 %v4466_v31 }
 0x9a1   : > { %v4468_v41 = vpop.xlane.xlu0 %4467 }
 0x9a2   : > { %v4469_v42 = vmul.f32 0.01, %v4468_v41 }
 0x9a4   : > { %v4470_v30 = vadd.f32 1e-05, %v4469_v42 }
 0x9a6   : > { %5968 = vrsqrt.f32 %v4470_v30 }
 0x9b3   : > { %v5969_v43 = vpop.eup %5968 }
 0x9b4   : > { %v4472_v44 = vmul.f32 %v5969_v43, %v4464_v28 }
 0x9b6   : > { %v4479_v14 = vmul.f32 %v5158_v29, %v4472_v44 }
 0x9b8   : > { %v4486_v13 = vadd.f32 %v5159_v45, %v4479_v14 }
 0x9ba   : > { %v4515_v46 = vpack.c.bf16 %v4486_v13, %v4486_v13 }
 0x9bc   : > { %5580 = vmatmul.mubr.msk.bf16.vlgmr.msra.gmra.mxu0 %vm4094_vm13, %v4515_v46  ;;  %5598 = vmatmul.mubr.msk.bf16.vlgmr.msra.gmra.mxu1 %vm4094_vm13, %v4515_v46 }
 0x9bd   : > { %5627 = vmatprep.mubr.msk.f32.mxu0 %vm6277_vm2, %v6276_v10  ;;  %5602 = vmatpush3.msk.msra.mxu0 %vm1178_vm0, %v4743_v1 }
 0x9be   : > { %5603 = vmatprep.subr.mxu0 %v6276_v10 }
 0x9bf   : > { %5604 = vmatpush3.msra.mxu0 %v4742_v7 }
 0x9c0   : > { %5605 = vmatprep.subr.mxu0 %v6276_v10 }
 0x9c1   : > { %5606 = vmatpush3.msra.mxu0 %v4741_v9 }
 0x9c2   : > { %5607 = vmatprep.subr.mxu0 %v6276_v10 }
 0x9c3   : > { %5608 = vmatpush3.msra.mxu0 %v4740_v15 }
 0x9c4   : > { %5609 = vmatprep.subr.mxu0 %v6276_v10 }
 0x9c5   : > { %5610 = vmatpush3.msra.mxu0 %v4739_v16 }
 0x9c6   : > { %5611 = vmatprep.subr.mxu0 %v6276_v10 }
 0x9c7   : > { %5612 = vmatpush3.msra.mxu0 %v4738_v18 }
 0x9c8   : > { %5613 = vmatprep.subr.mxu0 %v6276_v10 }
 0x9c9   : > { %5614 = vmatpush3.msra.mxu0 %v4737_v19 }
 0x9ca   : > { %5615 = vmatprep.subr.mxu0 %v6276_v10 }
 0x9cb   : > { %5616 = vmatpush3.msra.mxu0 %v4736_v20 }
 0x9cc   : > { %5617 = vmatprep.subr.mxu0 %v6276_v10 }
 0x9cd   : > { %5618 = vmatpush3.msra.mxu0 %v4735_v21 }
 0x9ce   : > { %5619 = vmatprep.subr.mxu0 %v6276_v10 }
 0x9cf   : > { %5620 = vmatpush3.msra.mxu0 %v4734_v22 }
 0x9d0   : > { %5621 = vmatprep.subr.mxu0 %v6276_v10 }
 0x9d1   : > { %5622 = vmatpush3.msra.mxu0 %v4733_v24 }
 0x9d2   : > { %5623 = vmatprep.subr.mxu0 %v6276_v10 }
 0x9d3   : > { %5624 = vmatpush3.msra.mxu0 %v4732_v25 }
 0x9d4   : > { %5625 = vmatprep.subr.mxu0 %v6276_v10 }
 0x9d5   : > { %5626 = vmatpush3.msra.mxu0 %v4731_v26 }
 0xa7c   : > { %v4602_v40 = vpop.f32.mrf.mxu0  ;;  %v4690_v48 = vpop.f32.mrf.mxu1 }
 0xa7d   : > { %v4691_v49 = vadd.f32 %v5169_v47, %v4690_v48  ;;  %v4603_v61 = vadd.f32 %v5160_v60, %v4602_v40 }
 0xa7e   : > { %v5581_v50 = vpop.f32.mrf.mxu0  ;;  %v5599_v51 = vpop.f32.mrf.mxu1 }
 0xa7f   : > { %v4696_v52 = vsub.f32 0.0, %v4691_v49 }
 0xa80   : > { %v4605_v53 = vpop.f32.mrf.mxu0  ;;  %v4693_v54 = vpop.f32.mrf.mxu1 }
 0xa81   : > { %v4697_v55 = vmul.f32 1.442695, %v4696_v52 }
 0xa82   : > { %v5582_v56 = vpop.f32.mrf.mxu0  ;;  %v5600_v57 = vpop.f32.mrf.mxu1 }
 0xa83   : > { %5970 = vpow2.f32 %v4697_v55 }
 0xa90   : > { %v5971_v58 = vpop.eup %5970 }
 0xa91   : > { %v4699_v59 = vadd.f32 1.0, %v5971_v58 }
 0xa93   : > { %5972 = vrcp.f32 %v4699_v59 }
 0xaa0   : > { %v5973_v62 = vpop.eup %5972 }
 0xaa1   : > { %v4701_v63 = vmul.f32 %v5973_v62, %v4603_v61 }
 0xaa3   : > { %v4704_v0 = vsel %vm4094_vm13, %v4701_v63, 0.0 }
 0xaa4   : > { %4705 = vadd.xlane.f32.xlu1 %v4704_v0 }
 0xb2d   : > { %v4706_v2 = vpop.xlane.xlu1 %4705 }
 0xb2e   : > { %v4707_v3 = vmul.f32 0.01, %v4706_v2 }
 0xb30   : > { %v4708_v4 = vsub.f32 %v4701_v63, %v4707_v3 }
 0xb32   : > { %v4709_v5 = vmul.f32 %v4708_v4, %v4708_v4 }
 0xb34   : > { %v4710_v6 = vsel %vm4094_vm13, %v4709_v5, 0.0 }
 0xb35   : > { %4711 = vadd.xlane.f32.xlu0 %v4710_v6 }
 0xbbe   : > { %v4712_v27 = vpop.xlane.xlu0 %4711 }
 0xbbf   : > { %v4713_v28 = vmul.f32 0.01, %v4712_v27 }
 0xbc1   : > { %v4714_v12 = vadd.f32 1e-05, %v4713_v28 }
 0xbc3   : > { %5974 = vrsqrt.f32 %v4714_v12 }
 0xbd0   : > { %v5975_v31 = vpop.eup %5974 }
 0xbd1   : > { %v4716_v33 = vmul.f32 %v5975_v31, %v4708_v4 }
 0xbd3   : > { %v4723_v35 = vmul.f32 %v5178_v32, %v4716_v33 }
 0xbd5   : > { %v4730_v11 = vadd.f32 %v5179_v34, %v4723_v35 }
 0xbd7   : > { %5628 = vmatmul.mubr.msk.f32.vlgmr.msra.gmra.mxu0 %vm4094_vm13, %v4730_v11 }
 0xc97   : > { %v4823_v10 = vpop.f32.mrf.mxu0 }
 0xc98   : > { %v4824_v17 = vadd.f32 %v5180_v36, %v4823_v10 }
 0xc99   : > { %v5629_v37 = vpop.f32.mrf.mxu0 }
 0xc9a   : > { %4827 = vst [vmem:[%s1078_s19] sm:$0xff] %v4824_v17 }
 0xc9b   : > { %6171 = shalt.err (!%p6168_p5)
}
 0xc9c   : > { %s6172_s0 = scalar_lea.hbm %s6958_s10, 128  ;;  %s6176_s11 = scalar_lea.hbm %s6446_s20, 256 }
 0xc9d   : > { %p6173_p6 = scmp.ne.s32.totalorder %s6958_s10, %s6172_s0  ;;  %p6177_p8 = scmp.lt.s32.totalorder %s6958_s10, %s6446_s20 }
 0xc9e   : > { %p6178_p11 = scmp.lt.s32.totalorder %s6176_s11, %s6172_s0 }
 0xc9f   : > { %p6174_p10 = pnand %p6173_p6, %p7068_p1 }
 0xca0   : > { %p6179_p0 = por %p6178_p11, %p6177_p8 }
 0xca1   : > { %p6175_p12 = pneg %p6174_p10 }
 0xca3   : > { %p6180_p9 = pnand %p6179_p0, %p6175_p12 }
 0xca5   : > { %6183 = shalt.err (!%p6180_p9)
}
 0xca6   : > { %5665 = dma.vmem_to_hbm [thread:$0]  (%p7068_p1), %s4843_s22, 128, %s6958_s10, %s4829_s28  }
 0xca7 PF: > { %s7069_s1 = sld [smem:[#allocation39_spill]] }
 0xca8   : > { %s7070_s17 = sld [smem:[#allocation37_spill]] }
 0xca9   : > { %s7071_s21 = sld [smem:[#allocation43_spill]] }
 0xcad   : > { %p5707_p3 = scmp.ge.s32.totalorder %s7069_s1, 2 }
 0xcae   : > { %s4854_s19 = sand.u32 1, %s7070_s17  }
 0xcaf   : > { %p7072_p2 = scmp.ne.s32.totalorder %s7071_s21, 0  ;;  %s4855_s7 = scalar_lea.sflag [#allocation4], %s4854_s19 }
 0xcb1   : > { %p5690_p4 = pnand %p5707_p3, %p7072_p2 }
 0xcb3   : > { %p5691_p7 = pneg %p5690_p4 }
 0xcb5   : > { %6217 = dma.done.wait (%p5691_p7), %s4855_s7, 128  }
 0xcb6   : > { %6219 = vsyncadd (%p5691_p7), %s4855_s7, 4294967168  ;;  %s7073_s28 = sld [smem:[#allocation40_spill]]  ;;  %s7076_s22 = smov %s6226_s23 }
 0xcb7   : > { %s7074_s16 = sld [smem:[#allocation38_spill]] }
 0xcb8   : > { %s7075_s26 = sld [smem:[#allocation41_spill]] }
 0xcbc   : > { %p77_p13 = scmp.ge.s32.totalorder %s7073_s28, 4  }
 0xcbd   : > { %s7077_s23 = smov %s7074_s16 }
 0xcbe   :  { %79 = sbr.rel (!%p77_p13) target bundleno = 59 (0x3b), region = 245 }
 0xcc3   :  { %4860 = vsyncpa [#allocation3], 1 }
 0xcc4   :  { %4862 = vsyncpa [#allocation3 + $0x1], 1 }
 0xcc5   :  { %4863 = vsyncpa [#allocation6], 1 }
 0xcc6   :  { %4864 = vsyncpa [#allocation9], 1 }
 0xcc7   :  { %4865 = vsyncpa [#allocation12], 1 }
 0xcc8   :  { %4866 = vsyncpa [#allocation4], 1 }
 0xcc9   :  { %4868 = vsyncpa [#allocation4 + $0x1], 1 }

</bundles_post_ra>
